<compile_context>
chip_gen: v6e
topology: v6e:2x2x1
jax: 0.10.0
libtpu: 0.0.40
codegen_flags: <defaults>
</compile_context>

<pallas_src>
import numpy as np
import jax
import jax.numpy as jnp
from jax import lax
from jax.experimental import pallas as pl
from jax.experimental.pallas import tpu as pltpu

G = 16                     # channels per group: GroupNorm(channels // G, channels)
EPS = 1e-5                 # PyTorch GroupNorm default eps
MXU_DTYPE = jnp.bfloat16   # matmul operand dtype (accumulation stays f32)


# ------------------------------------------------------------------
# Fused kernel: (GroupNorm -> ReLU -> 3x3x3 'same' Conv3d) x2 + residual
# ------------------------------------------------------------------
def _res_block_kernel(x_ref, gb1_ref, gb2_ref, pe_ref, w1_ref, w2_ref,
                      o_ref, yb_ref):
    _, D, H, WC = x_ref.shape          # lane-dense: WC = W * C
    kD = w1_ref.shape[0]
    kH = w1_ref.shape[1] // WC         # taps stacked along K: (kD, kH*WC, WC)
    pd = kD // 2

    # D-axis 'same' padding: the halo planes of the scratch stay zero and are
    # never written with data; the interior is fully overwritten each stage.
    # Zeroed per grid step (cheap: 2 planes) so the kernel remains correct
    # when the 'parallel' grid axis is split across TensorCores.
    zplane = jnp.zeros((pd, H, kH * WC), yb_ref.dtype)
    yb_ref[0:pd, :, :] = zplane
    yb_ref[pd + D:pd + D + pd, :, :] = zplane

    pe = pe_ref[...]                   # (WC, WC): fused pool+expand GN matrix

    def gn_relu(v, gb_ref):
        """v: (D*H, WC) f32 -> GroupNorm + ReLU (two-pass f32 statistics)."""
        s1 = jnp.sum(v, axis=0, keepdims=True)                      # (1, WC)
        mean = jnp.dot(s1, pe, preferred_element_type=jnp.float32)  # lane-dense group mean
        vc = v - mean
        s2 = jnp.sum(vc * vc, axis=0, keepdims=True)
        var = jnp.dot(s2, pe, preferred_element_type=jnp.float32)   # lane-dense group var
        inv = lax.rsqrt(var + EPS)
        gamma = gb_ref[0:1, :]                                      # pre-expanded (1, WC)
        beta = gb_ref[1:2, :]
        return jnp.maximum(vc * (gamma * inv) + beta, 0.0)

    def store_bands(y):
        """Write y into three sublane-aligned H-shifted bands (lane axis):
             lanes [0,   WC): tap dy=0 -> rows shifted by +1 in h (zero at h=0)
             lanes [WC, 2WC): tap dy=1 -> y unshifted
             lanes [2WC,3WC): tap dy=2 -> rows shifted by -1 in h (zero at h=H-1)
           so every conv tap read below is a leading-(D)-axis slice plus a
           free (D,H,3WC)->(D*H,3WC) reshape (no per-tap relayouts)."""
        y3 = y.reshape(D, H, WC)                                    # f32
        dt = yb_ref.dtype
        zrow = jnp.zeros((D, 1, WC), dt)
        # dy = 0 band
        yb_ref[pd:pd + D, 0:1, 0:WC] = zrow
        yb_ref[pd:pd + D, 1:H, 0:WC] = y3[:, :H - 1, :].astype(dt)
        # dy = 1 (center) band
        yb_ref[pd:pd + D, :, WC:2 * WC] = y3.astype(dt)
        # dy = 2 band
        yb_ref[pd:pd + D, 0:H - 1, 2 * WC:3 * WC] = y3[:, 1:, :].astype(dt)
        yb_ref[pd:pd + D, H - 1:H, 2 * WC:3 * WC] = zrow

    def conv(w_ref):
        """kD deep-K bf16 matmuls (K = kH*WC) vs stacked block-Toeplitz weights;
           single uninterrupted f32 accumulation chain."""
        acc = None
        for dz in range(kD):
            slab = yb_ref[dz:dz + D, :, :].reshape(D * H, kH * WC)  # aligned
            t = jnp.dot(slab, w_ref[dz], preferred_element_type=jnp.float32)
            acc = t if acc is None else acc + t
        return acc                                                  # (D*H, WC) f32

    x = x_ref[...].astype(jnp.float32).reshape(D * H, WC)

    # Stage 1: GN -> ReLU -> conv1   (intermediate never leaves registers)
    store_bands(gn_relu(x, gb1_ref))
    h1 = conv(w1_ref)

    # Stage 2: GN -> ReLU -> conv2 -> + residual
    store_bands(gn_relu(h1, gb2_ref))
    out = conv(w2_ref) + x

    o_ref[...] = out.reshape(1, D, H, WC).astype(o_ref.dtype)


# ------------------------------------------------------------------
# Host-side weight / helper-matrix preparation
# ------------------------------------------------------------------
def _toeplitz_weights(w, W, dtype=MXU_DTYPE):
    """(kD,kH,kW,Cin,Cout) -> (kD, kH*W*Cin, W*Cout): block-Toeplitz over W
    ('same' W padding folded in as zero rows), with the kH taps stacked along
    K in the same order as the shifted-band scratch layout."""
    kD, kH, kW, Cin, Cout = w.shape
    pw = kW // 2
    sel = np.zeros((kW, W, W), np.float32)        # (dx, w_in, w_out)
    for dx in range(kW):
        for wo in range(W):
            wi = wo + dx - pw
            if 0 <= wi < W:
                sel[dx, wi, wo] = 1.0
    wt = jnp.einsum("zyxio,xpw->zypiwo", w.astype(jnp.float32), jnp.asarray(sel))
    return wt.reshape(kD, kH * W * Cin, W * Cout).astype(dtype)


def _gn_pool_expand(D, H, W, C, num_groups):
    """(W*C, W*C) matrix mapping per-lane spatial sums -> per-lane group means
    (pool and lane-expand fused into a single matmul)."""
    cg = C // num_groups
    gid = np.arange(C) // cg
    same = (gid[:, None] == gid[None, :]).astype(np.float32)          # (C, C)
    pe = np.tile(same, (W, W)) / float(D * H * W * cg)                # (W*C, W*C)
    return jnp.asarray(pe)


# ------------------------------------------------------------------
# ResBlock forward: x -> GNReLUConv -> GNReLUConv -> (+ residual)
# ------------------------------------------------------------------
def res_block(x, params):
    """x: (N, D, H, W, C) channels-last."""
    N, D, H, W, C = x.shape
    assert C % G == 0
    num_groups = C // G
    kD, kH, kW = params["w1"].shape[:3]
    assert (kD, kH, kW) == (3, 3, 3), "only kernel_size=3 ('same') supported"
    WC = W * C

    xf = x.reshape(N, D, H, WC)                    # lane-dense fold (free reshape)
    pe = _gn_pool_expand(D, H, W, C, num_groups)
    # gamma/beta pre-expanded to lane-dense (1, W*C) on the host (data-independent).
    gb1 = jnp.stack([jnp.tile(params["gamma1"].astype(jnp.float32), W),
                     jnp.tile(params["beta1"].astype(jnp.float32), W)])
    gb2 = jnp.stack([jnp.tile(params["gamma2"].astype(jnp.float32), W),
                     jnp.tile(params["beta2"].astype(jnp.float32), W)])
    w1 = _toeplitz_weights(params["w1"], W)
    w2 = _toeplitz_weights(params["w2"], W)

    isz = jnp.dtype(x.dtype).itemsize
    wsz = jnp.dtype(MXU_DTYPE).itemsize
    cost = pl.CostEstimate(
        flops=2 * 2 * N * kD * (D * H) * (kH * WC) * WC,
        transcendentals=2 * N * WC,
        bytes_accessed=int(2 * N * D * H * WC * isz           # x in + out
                           + 2 * kD * kH * WC * WC * wsz      # w1 + w2
                           + WC * WC * 4 + 2 * 2 * WC * 4))   # pe + gamma/beta

    out = pl.pallas_call(
        _res_block_kernel,
        out_shape=jax.ShapeDtypeStruct((N, D, H, WC), x.dtype),
        grid=(N,),
        in_specs=[
            pl.BlockSpec((1, D, H, WC), lambda n: (n, 0, 0, 0)),
            pl.BlockSpec((2, WC), lambda n: (0, 0)),
            pl.BlockSpec((2, WC), lambda n: (0, 0)),
            pl.BlockSpec((WC, WC), lambda n: (0, 0)),
            pl.BlockSpec((kD, kH * WC, WC), lambda n: (0, 0, 0)),
            pl.BlockSpec((kD, kH * WC, WC), lambda n: (0, 0, 0)),
        ],
        out_specs=pl.BlockSpec((1, D, H, WC), lambda n: (n, 0, 0, 0)),
        scratch_shapes=[pltpu.VMEM((D + kD - 1, H, kH * WC), MXU_DTYPE)],
        compiler_params=pltpu.CompilerParams(
            dimension_semantics=("parallel",),
            # Generation-agnostic at demo scale; retune per generation for
            # production tiles (<= ~56 MiB on v7x, higher on v5e/v6e).
            vmem_limit_bytes=32 * 1024 * 1024),
        cost_estimate=cost,
    )(xf, gb1, gb2, pe, w1, w2)
    return out.reshape(N, D, H, W, C)


# ------------------------------------------------------------------
# Pure-JAX reference (strict f32 path) for correctness check
# ------------------------------------------------------------------
def _ref_gn_relu(x, gamma, beta, num_groups):
    N, D, H, W, C = x.shape
    xg = x.reshape(N, D, H, W, num_groups, C // num_groups)
    mean = xg.mean(axis=(1, 2, 3, 5), keepdims=True)
    var = ((xg - mean) ** 2).mean(axis=(1, 2, 3, 5), keepdims=True)
    xn = ((xg - mean) / jnp.sqrt(var + EPS)).reshape(N, D, H, W, C)
    return jnp.maximum(xn * gamma + beta, 0.0)


def _ref_conv(y, w):
    return lax.conv_general_dilated(
        y, w, window_strides=(1, 1, 1), padding="SAME",
        dimension_numbers=("NDHWC", "DHWIO", "NDHWC"),
        precision=lax.Precision.HIGHEST)


def _ref_res_block(x, params):
    num_groups = x.shape[-1] // G
    y = _ref_gn_relu(x, params["gamma1"], params["beta1"], num_groups)
    y = _ref_conv(y, params["w1"])
    y = _ref_gn_relu(y, params["gamma2"], params["beta2"], num_groups)
    y = _ref_conv(y, params["w2"])
    return y + x


if __name__ == "__main__":
    # Small shapes consistent with Conv3d / GroupNorm(C // 16, C): C must be a
    # multiple of G=16.  PyTorch input layout is NCDHW = (2, 16, 4, 8, 8);
    # W*C = 128 keeps every kernel block lane-dense.
    N, C, D, H, W = 2, 16, 4, 8, 8
    key = jax.random.PRNGKey(0)
    k1, k2, k3, k4, k5, k6, k7 = jax.random.split(key, 7)

    x_ncdhw = jax.random.normal(k1, (N, C, D, H, W), jnp.float32)   # PyTorch layout
    x = jnp.transpose(x_ncdhw, (0, 2, 3, 4, 1))                     # -> NDHWC

    fan_in = 3 * 3 * 3 * C
    params = {
        "gamma1": 1.0 + 0.1 * jax.random.normal(k2, (C,), jnp.float32),
        "beta1": 0.1 * jax.random.normal(k3, (C,), jnp.float32),
        # weights stored as (kD, kH, kW, Cin, Cout)
        "w1": jax.random.normal(k4, (3, 3, 3, C, C), jnp.float32) / jnp.sqrt(fan_in),
        "gamma2": 1.0 + 0.1 * jax.random.normal(k5, (C,), jnp.float32),
        "beta2": 0.1 * jax.random.normal(k6, (C,), jnp.float32),
        "w2": jax.random.normal(k7, (3, 3, 3, C, C), jnp.float32) / jnp.sqrt(fan_in),
    }

    out = jax.block_until_ready(res_block(x, params))
    ref = jax.block_until_ready(_ref_res_block(x, params))
    max_err = float(jnp.max(jnp.abs(out - ref)))
    assert out.shape == (N, D, H, W, C)
    # bf16 MXU operands vs the strict-f32 reference conv give ~1e-2-level
    # absolute differences; all statistics / accumulation / residual are f32.
    assert max_err < 3e-2, f"mismatch vs reference: max abs err = {max_err}"
    print("KERNEL_OK")
</pallas_src>

<mosaic_0001>
module attributes {stable_mosaic.version = 11 : i64} {
  func.func @_res_block_kernel(%arg0: i32, %arg1: memref<1x4x8x128xf32, #tpu.memory_space<vmem>>, %arg2: memref<2x128xf32, #tpu.memory_space<vmem>>, %arg3: memref<2x128xf32, #tpu.memory_space<vmem>>, %arg4: memref<128x128xf32, #tpu.memory_space<vmem>>, %arg5: memref<3x384x128xbf16, #tpu.memory_space<vmem>>, %arg6: memref<3x384x128xbf16, #tpu.memory_space<vmem>>, %arg7: memref<1x4x8x128xf32, #tpu.memory_space<vmem>>, %arg8: memref<6x8x384xbf16, #tpu.memory_space<vmem>>) attributes {dimension_semantics = [#tpu.dimension_semantics<parallel>], iteration_bounds = array<i64: 2>, scalar_prefetch = 0 : i64, scratch_operands = 1 : i64, tpu.core_type = #tpu.core_type<tc>, window_params = [{transform_indices = @transform_0, window_bounds = array<i64: 1, 4, 8, 128>}, {pipeline_mode = #tpu.pipeline_mode<synchronous>, transform_indices = @transform_1, window_bounds = array<i64: 2, 128>}, {pipeline_mode = #tpu.pipeline_mode<synchronous>, transform_indices = @transform_2, window_bounds = array<i64: 2, 128>}, {pipeline_mode = #tpu.pipeline_mode<synchronous>, transform_indices = @transform_3, window_bounds = array<i64: 128, 128>}, {pipeline_mode = #tpu.pipeline_mode<synchronous>, transform_indices = @transform_4, window_bounds = array<i64: 3, 384, 128>}, {pipeline_mode = #tpu.pipeline_mode<synchronous>, transform_indices = @transform_5, window_bounds = array<i64: 3, 384, 128>}, {transform_indices = @transform_6, window_bounds = array<i64: 1, 4, 8, 128>}]} {
    %cst = arith.constant 0.000000e+00 : bf16
    %0 = vector.broadcast %cst : bf16 to vector<1x8x384xbf16>
    %c0 = arith.constant 0 : index
    %c0_0 = arith.constant 0 : index
    %c0_1 = arith.constant 0 : index
    %1 = vector.load %arg8[%c0, %c0_0, %c0_1] : memref<6x8x384xbf16, #tpu.memory_space<vmem>>, vector<1x8x384xbf16>
    tpu.vector_store %arg8[%c0, %c0_0, %c0_1], %0 {strides = array<i32>} : memref<6x8x384xbf16, #tpu.memory_space<vmem>>, vector<1x8x384xbf16>,
    %c5 = arith.constant 5 : index
    %c0_2 = arith.constant 0 : index
    %c0_3 = arith.constant 0 : index
    %2 = vector.load %arg8[%c5, %c0_2, %c0_3] : memref<6x8x384xbf16, #tpu.memory_space<vmem>>, vector<1x8x384xbf16>
    tpu.vector_store %arg8[%c5, %c0_2, %c0_3], %0 {strides = array<i32>} : memref<6x8x384xbf16, #tpu.memory_space<vmem>>, vector<1x8x384xbf16>,
    %c0_4 = arith.constant 0 : index
    %c0_5 = arith.constant 0 : index
    %3 = vector.load %arg4[%c0_4, %c0_5] : memref<128x128xf32, #tpu.memory_space<vmem>>, vector<128x128xf32>
    %c0_6 = arith.constant 0 : index
    %c0_7 = arith.constant 0 : index
    %c0_8 = arith.constant 0 : index
    %c0_9 = arith.constant 0 : index
    %4 = vector.load %arg1[%c0_6, %c0_7, %c0_8, %c0_9] : memref<1x4x8x128xf32, #tpu.memory_space<vmem>>, vector<1x4x8x128xf32>
    %5 = vector.shape_cast %4 : vector<1x4x8x128xf32> to vector<32x128xf32>
    %cst_10 = arith.constant dense<0.000000e+00> : vector<128xf32>
    %6 = vector.multi_reduction <add>, %5, %cst_10 [0] : vector<32x128xf32> to vector<128xf32>
    %7 = vector.shape_cast %6 : vector<128xf32> to vector<1x128xf32>
    %cst_11 = arith.constant dense<0.000000e+00> : vector<1x128xf32>
    %8 = tpu.matmul %7, %3, %cst_11 {dimension_numbers = #tpu.dot_dimension_numbers<[1], [0], [0], [1], [0, 0, 1, 1], [], []>} : vector<1x128xf32>, vector<128x128xf32>, vector<1x128xf32> -> vector<1x128xf32>
    %9 = vector.broadcast %8 : vector<1x128xf32> to vector<32x128xf32>
    %10 = arith.subf %5, %9 : vector<32x128xf32>
    %11 = arith.mulf %10, %10 : vector<32x128xf32>
    %cst_12 = arith.constant dense<0.000000e+00> : vector<128xf32>
    %12 = vector.multi_reduction <add>, %11, %cst_12 [0] : vector<32x128xf32> to vector<128xf32>
    %13 = vector.shape_cast %12 : vector<128xf32> to vector<1x128xf32>
    %cst_13 = arith.constant dense<0.000000e+00> : vector<1x128xf32>
    %14 = tpu.matmul %13, %3, %cst_13 {dimension_numbers = #tpu.dot_dimension_numbers<[1], [0], [0], [1], [0, 0, 1, 1], [], []>} : vector<1x128xf32>, vector<128x128xf32>, vector<1x128xf32> -> vector<1x128xf32>
    %cst_14 = arith.constant 9.99999974E-6 : f32
    %15 = vector.broadcast %cst_14 : f32 to vector<1x128xf32>
    %16 = arith.addf %14, %15 : vector<1x128xf32>
    %17 = math.rsqrt %16 : vector<1x128xf32>
    %c0_15 = arith.constant 0 : index
    %c0_16 = arith.constant 0 : index
    %18 = vector.load %arg2[%c0_15, %c0_16] : memref<2x128xf32, #tpu.memory_space<vmem>>, vector<1x128xf32>
    %c1 = arith.constant 1 : index
    %c0_17 = arith.constant 0 : index
    %19 = vector.load %arg2[%c1, %c0_17] : memref<2x128xf32, #tpu.memory_space<vmem>>, vector<1x128xf32>
    %20 = arith.mulf %18, %17 : vector<1x128xf32>
    %21 = vector.broadcast %20 : vector<1x128xf32> to vector<32x128xf32>
    %22 = arith.mulf %10, %21 : vector<32x128xf32>
    %23 = vector.broadcast %19 : vector<1x128xf32> to vector<32x128xf32>
    %24 = arith.addf %22, %23 : vector<32x128xf32>
    %cst_18 = arith.constant 0.000000e+00 : f32
    %25 = vector.broadcast %cst_18 : f32 to vector<32x128xf32>
    %26 = arith.maximumf %24, %25 : vector<32x128xf32>
    %27 = vector.shape_cast %26 : vector<32x128xf32> to vector<4x8x128xf32>
    %cst_19 = arith.constant 0.000000e+00 : bf16
    %28 = vector.broadcast %cst_19 : bf16 to vector<4x1x128xbf16>
    %c1_20 = arith.constant 1 : index
    %c0_21 = arith.constant 0 : index
    %c0_22 = arith.constant 0 : index
    %29 = vector.load %arg8[%c1_20, %c0_21, %c0_22] : memref<6x8x384xbf16, #tpu.memory_space<vmem>>, vector<4x1x128xbf16>
    tpu.vector_store %arg8[%c1_20, %c0_21, %c0_22], %28 {strides = array<i32>} : memref<6x8x384xbf16, #tpu.memory_space<vmem>>, vector<4x1x128xbf16>,
    %30 = vector.extract_strided_slice %27 {offsets = [0, 0, 0], sizes = [4, 7, 128], strides = [1, 1, 1]} : vector<4x8x128xf32> to vector<4x7x128xf32>
    %31 = arith.truncf %30 : vector<4x7x128xf32> to vector<4x7x128xbf16>
    %c1_23 = arith.constant 1 : index
    %c1_24 = arith.constant 1 : index
    %c0_25 = arith.constant 0 : index
    %32 = vector.load %arg8[%c1_23, %c1_24, %c0_25] : memref<6x8x384xbf16, #tpu.memory_space<vmem>>, vector<4x7x128xbf16>
    tpu.vector_store %arg8[%c1_23, %c1_24, %c0_25], %31 {strides = array<i32>} : memref<6x8x384xbf16, #tpu.memory_space<vmem>>, vector<4x7x128xbf16>,
    %33 = arith.truncf %27 : vector<4x8x128xf32> to vector<4x8x128xbf16>
    %c1_26 = arith.constant 1 : index
    %c0_27 = arith.constant 0 : index
    %c128 = arith.constant 128 : index
    %34 = vector.load %arg8[%c1_26, %c0_27, %c128] : memref<6x8x384xbf16, #tpu.memory_space<vmem>>, vector<4x8x128xbf16>
    tpu.vector_store %arg8[%c1_26, %c0_27, %c128], %33 {strides = array<i32>} : memref<6x8x384xbf16, #tpu.memory_space<vmem>>, vector<4x8x128xbf16>,
    %35 = vector.extract_strided_slice %27 {offsets = [0, 1, 0], sizes = [4, 7, 128], strides = [1, 1, 1]} : vector<4x8x128xf32> to vector<4x7x128xf32>
    %36 = arith.truncf %35 : vector<4x7x128xf32> to vector<4x7x128xbf16>
    %c1_28 = arith.constant 1 : index
    %c0_29 = arith.constant 0 : index
    %c256 = arith.constant 256 : index
    %37 = vector.load %arg8[%c1_28, %c0_29, %c256] : memref<6x8x384xbf16, #tpu.memory_space<vmem>>, vector<4x7x128xbf16>
    tpu.vector_store %arg8[%c1_28, %c0_29, %c256], %36 {strides = array<i32>} : memref<6x8x384xbf16, #tpu.memory_space<vmem>>, vector<4x7x128xbf16>,
    %c1_30 = arith.constant 1 : index
    %c7 = arith.constant 7 : index
    %c256_31 = arith.constant 256 : index
    %38 = vector.load %arg8[%c1_30, %c7, %c256_31] : memref<6x8x384xbf16, #tpu.memory_space<vmem>>, vector<4x1x128xbf16>
    tpu.vector_store %arg8[%c1_30, %c7, %c256_31], %28 {strides = array<i32>} : memref<6x8x384xbf16, #tpu.memory_space<vmem>>, vector<4x1x128xbf16>,
    %c0_32 = arith.constant 0 : index
    %c0_33 = arith.constant 0 : index
    %c0_34 = arith.constant 0 : index
    %39 = vector.load %arg8[%c0_32, %c0_33, %c0_34] : memref<6x8x384xbf16, #tpu.memory_space<vmem>>, vector<4x8x384xbf16>
    %40 = vector.shape_cast %39 : vector<4x8x384xbf16> to vector<32x384xbf16>
    %c0_35 = arith.constant 0 : index
    %c0_36 = arith.constant 0 : index
    %c0_37 = arith.constant 0 : index
    %41 = vector.load %arg5[%c0_35, %c0_36, %c0_37] : memref<3x384x128xbf16, #tpu.memory_space<vmem>>, vector<1x384x128xbf16>
    %42 = vector.shape_cast %41 : vector<1x384x128xbf16> to vector<384x128xbf16>
    %cst_38 = arith.constant dense<0.000000e+00> : vector<32x128xf32>
    %43 = tpu.matmul %40, %42, %cst_38 {dimension_numbers = #tpu.dot_dimension_numbers<[1], [0], [0], [1], [0, 0, 1, 1], [], []>} : vector<32x384xbf16>, vector<384x128xbf16>, vector<32x128xf32> -> vector<32x128xf32>
    %c1_39 = arith.constant 1 : index
    %c0_40 = arith.constant 0 : index
    %c0_41 = arith.constant 0 : index
    %44 = vector.load %arg8[%c1_39, %c0_40, %c0_41] : memref<6x8x384xbf16, #tpu.memory_space<vmem>>, vector<4x8x384xbf16>
    %45 = vector.shape_cast %44 : vector<4x8x384xbf16> to vector<32x384xbf16>
    %c1_42 = arith.constant 1 : index
    %c0_43 = arith.constant 0 : index
    %c0_44 = arith.constant 0 : index
    %46 = vector.load %arg5[%c1_42, %c0_43, %c0_44] : memref<3x384x128xbf16, #tpu.memory_space<vmem>>, vector<1x384x128xbf16>
    %47 = vector.shape_cast %46 : vector<1x384x128xbf16> to vector<384x128xbf16>
    %cst_45 = arith.constant dense<0.000000e+00> : vector<32x128xf32>
    %48 = tpu.matmul %45, %47, %cst_45 {dimension_numbers = #tpu.dot_dimension_numbers<[1], [0], [0], [1], [0, 0, 1, 1], [], []>} : vector<32x384xbf16>, vector<384x128xbf16>, vector<32x128xf32> -> vector<32x128xf32>
    %49 = arith.addf %43, %48 : vector<32x128xf32>
    %c2 = arith.constant 2 : index
    %c0_46 = arith.constant 0 : index
    %c0_47 = arith.constant 0 : index
    %50 = vector.load %arg8[%c2, %c0_46, %c0_47] : memref<6x8x384xbf16, #tpu.memory_space<vmem>>, vector<4x8x384xbf16>
    %51 = vector.shape_cast %50 : vector<4x8x384xbf16> to vector<32x384xbf16>
    %c2_48 = arith.constant 2 : index
    %c0_49 = arith.constant 0 : index
    %c0_50 = arith.constant 0 : index
    %52 = vector.load %arg5[%c2_48, %c0_49, %c0_50] : memref<3x384x128xbf16, #tpu.memory_space<vmem>>, vector<1x384x128xbf16>
    %53 = vector.shape_cast %52 : vector<1x384x128xbf16> to vector<384x128xbf16>
    %cst_51 = arith.constant dense<0.000000e+00> : vector<32x128xf32>
    %54 = tpu.matmul %51, %53, %cst_51 {dimension_numbers = #tpu.dot_dimension_numbers<[1], [0], [0], [1], [0, 0, 1, 1], [], []>} : vector<32x384xbf16>, vector<384x128xbf16>, vector<32x128xf32> -> vector<32x128xf32>
    %55 = arith.addf %49, %54 : vector<32x128xf32>
    %cst_52 = arith.constant dense<0.000000e+00> : vector<128xf32>
    %56 = vector.multi_reduction <add>, %55, %cst_52 [0] : vector<32x128xf32> to vector<128xf32>
    %57 = vector.shape_cast %56 : vector<128xf32> to vector<1x128xf32>
    %cst_53 = arith.constant dense<0.000000e+00> : vector<1x128xf32>
    %58 = tpu.matmul %57, %3, %cst_53 {dimension_numbers = #tpu.dot_dimension_numbers<[1], [0], [0], [1], [0, 0, 1, 1], [], []>} : vector<1x128xf32>, vector<128x128xf32>, vector<1x128xf32> -> vector<1x128xf32>
    %59 = vector.broadcast %58 : vector<1x128xf32> to vector<32x128xf32>
    %60 = arith.subf %55, %59 : vector<32x128xf32>
    %61 = arith.mulf %60, %60 : vector<32x128xf32>
    %cst_54 = arith.constant dense<0.000000e+00> : vector<128xf32>
    %62 = vector.multi_reduction <add>, %61, %cst_54 [0] : vector<32x128xf32> to vector<128xf32>
    %63 = vector.shape_cast %62 : vector<128xf32> to vector<1x128xf32>
    %cst_55 = arith.constant dense<0.000000e+00> : vector<1x128xf32>
    %64 = tpu.matmul %63, %3, %cst_55 {dimension_numbers = #tpu.dot_dimension_numbers<[1], [0], [0], [1], [0, 0, 1, 1], [], []>} : vector<1x128xf32>, vector<128x128xf32>, vector<1x128xf32> -> vector<1x128xf32>
    %cst_56 = arith.constant 9.99999974E-6 : f32
    %65 = vector.broadcast %cst_56 : f32 to vector<1x128xf32>
    %66 = arith.addf %64, %65 : vector<1x128xf32>
    %67 = math.rsqrt %66 : vector<1x128xf32>
    %c0_57 = arith.constant 0 : index
    %c0_58 = arith.constant 0 : index
    %68 = vector.load %arg3[%c0_57, %c0_58] : memref<2x128xf32, #tpu.memory_space<vmem>>, vector<1x128xf32>
    %c1_59 = arith.constant 1 : index
    %c0_60 = arith.constant 0 : index
    %69 = vector.load %arg3[%c1_59, %c0_60] : memref<2x128xf32, #tpu.memory_space<vmem>>, vector<1x128xf32>
    %70 = arith.mulf %68, %67 : vector<1x128xf32>
    %71 = vector.broadcast %70 : vector<1x128xf32> to vector<32x128xf32>
    %72 = arith.mulf %60, %71 : vector<32x128xf32>
    %73 = vector.broadcast %69 : vector<1x128xf32> to vector<32x128xf32>
    %74 = arith.addf %72, %73 : vector<32x128xf32>
    %cst_61 = arith.constant 0.000000e+00 : f32
    %75 = vector.broadcast %cst_61 : f32 to vector<32x128xf32>
    %76 = arith.maximumf %74, %75 : vector<32x128xf32>
    %77 = vector.shape_cast %76 : vector<32x128xf32> to vector<4x8x128xf32>
    %cst_62 = arith.constant 0.000000e+00 : bf16
    %78 = vector.broadcast %cst_62 : bf16 to vector<4x1x128xbf16>
    %c1_63 = arith.constant 1 : index
    %c0_64 = arith.constant 0 : index
    %c0_65 = arith.constant 0 : index
    %79 = vector.load %arg8[%c1_63, %c0_64, %c0_65] : memref<6x8x384xbf16, #tpu.memory_space<vmem>>, vector<4x1x128xbf16>
    tpu.vector_store %arg8[%c1_63, %c0_64, %c0_65], %78 {strides = array<i32>} : memref<6x8x384xbf16, #tpu.memory_space<vmem>>, vector<4x1x128xbf16>,
    %80 = vector.extract_strided_slice %77 {offsets = [0, 0, 0], sizes = [4, 7, 128], strides = [1, 1, 1]} : vector<4x8x128xf32> to vector<4x7x128xf32>
    %81 = arith.truncf %80 : vector<4x7x128xf32> to vector<4x7x128xbf16>
    %c1_66 = arith.constant 1 : index
    %c1_67 = arith.constant 1 : index
    %c0_68 = arith.constant 0 : index
    %82 = vector.load %arg8[%c1_66, %c1_67, %c0_68] : memref<6x8x384xbf16, #tpu.memory_space<vmem>>, vector<4x7x128xbf16>
    tpu.vector_store %arg8[%c1_66, %c1_67, %c0_68], %81 {strides = array<i32>} : memref<6x8x384xbf16, #tpu.memory_space<vmem>>, vector<4x7x128xbf16>,
    %83 = arith.truncf %77 : vector<4x8x128xf32> to vector<4x8x128xbf16>
    %c1_69 = arith.constant 1 : index
    %c0_70 = arith.constant 0 : index
    %c128_71 = arith.constant 128 : index
    %84 = vector.load %arg8[%c1_69, %c0_70, %c128_71] : memref<6x8x384xbf16, #tpu.memory_space<vmem>>, vector<4x8x128xbf16>
    tpu.vector_store %arg8[%c1_69, %c0_70, %c128_71], %83 {strides = array<i32>} : memref<6x8x384xbf16, #tpu.memory_space<vmem>>, vector<4x8x128xbf16>,
    %85 = vector.extract_strided_slice %77 {offsets = [0, 1, 0], sizes = [4, 7, 128], strides = [1, 1, 1]} : vector<4x8x128xf32> to vector<4x7x128xf32>
    %86 = arith.truncf %85 : vector<4x7x128xf32> to vector<4x7x128xbf16>
    %c1_72 = arith.constant 1 : index
    %c0_73 = arith.constant 0 : index
    %c256_74 = arith.constant 256 : index
    %87 = vector.load %arg8[%c1_72, %c0_73, %c256_74] : memref<6x8x384xbf16, #tpu.memory_space<vmem>>, vector<4x7x128xbf16>
    tpu.vector_store %arg8[%c1_72, %c0_73, %c256_74], %86 {strides = array<i32>} : memref<6x8x384xbf16, #tpu.memory_space<vmem>>, vector<4x7x128xbf16>,
    %c1_75 = arith.constant 1 : index
    %c7_76 = arith.constant 7 : index
    %c256_77 = arith.constant 256 : index
    %88 = vector.load %arg8[%c1_75, %c7_76, %c256_77] : memref<6x8x384xbf16, #tpu.memory_space<vmem>>, vector<4x1x128xbf16>
    tpu.vector_store %arg8[%c1_75, %c7_76, %c256_77], %78 {strides = array<i32>} : memref<6x8x384xbf16, #tpu.memory_space<vmem>>, vector<4x1x128xbf16>,
    %c0_78 = arith.constant 0 : index
    %c0_79 = arith.constant 0 : index
    %c0_80 = arith.constant 0 : index
    %89 = vector.load %arg8[%c0_78, %c0_79, %c0_80] : memref<6x8x384xbf16, #tpu.memory_space<vmem>>, vector<4x8x384xbf16>
    %90 = vector.shape_cast %89 : vector<4x8x384xbf16> to vector<32x384xbf16>
    %c0_81 = arith.constant 0 : index
    %c0_82 = arith.constant 0 : index
    %c0_83 = arith.constant 0 : index
    %91 = vector.load %arg6[%c0_81, %c0_82, %c0_83] : memref<3x384x128xbf16, #tpu.memory_space<vmem>>, vector<1x384x128xbf16>
    %92 = vector.shape_cast %91 : vector<1x384x128xbf16> to vector<384x128xbf16>
    %cst_84 = arith.constant dense<0.000000e+00> : vector<32x128xf32>
    %93 = tpu.matmul %90, %92, %cst_84 {dimension_numbers = #tpu.dot_dimension_numbers<[1], [0], [0], [1], [0, 0, 1, 1], [], []>} : vector<32x384xbf16>, vector<384x128xbf16>, vector<32x128xf32> -> vector<32x128xf32>
    %c1_85 = arith.constant 1 : index
    %c0_86 = arith.constant 0 : index
    %c0_87 = arith.constant 0 : index
    %94 = vector.load %arg8[%c1_85, %c0_86, %c0_87] : memref<6x8x384xbf16, #tpu.memory_space<vmem>>, vector<4x8x384xbf16>
    %95 = vector.shape_cast %94 : vector<4x8x384xbf16> to vector<32x384xbf16>
    %c1_88 = arith.constant 1 : index
    %c0_89 = arith.constant 0 : index
    %c0_90 = arith.constant 0 : index
    %96 = vector.load %arg6[%c1_88, %c0_89, %c0_90] : memref<3x384x128xbf16, #tpu.memory_space<vmem>>, vector<1x384x128xbf16>
    %97 = vector.shape_cast %96 : vector<1x384x128xbf16> to vector<384x128xbf16>
    %cst_91 = arith.constant dense<0.000000e+00> : vector<32x128xf32>
    %98 = tpu.matmul %95, %97, %cst_91 {dimension_numbers = #tpu.dot_dimension_numbers<[1], [0], [0], [1], [0, 0, 1, 1], [], []>} : vector<32x384xbf16>, vector<384x128xbf16>, vector<32x128xf32> -> vector<32x128xf32>
    %99 = arith.addf %93, %98 : vector<32x128xf32>
    %c2_92 = arith.constant 2 : index
    %c0_93 = arith.constant 0 : index
    %c0_94 = arith.constant 0 : index
    %100 = vector.load %arg8[%c2_92, %c0_93, %c0_94] : memref<6x8x384xbf16, #tpu.memory_space<vmem>>, vector<4x8x384xbf16>
    %101 = vector.shape_cast %100 : vector<4x8x384xbf16> to vector<32x384xbf16>
    %c2_95 = arith.constant 2 : index
    %c0_96 = arith.constant 0 : index
    %c0_97 = arith.constant 0 : index
    %102 = vector.load %arg6[%c2_95, %c0_96, %c0_97] : memref<3x384x128xbf16, #tpu.memory_space<vmem>>, vector<1x384x128xbf16>
    %103 = vector.shape_cast %102 : vector<1x384x128xbf16> to vector<384x128xbf16>
    %cst_98 = arith.constant dense<0.000000e+00> : vector<32x128xf32>
    %104 = tpu.matmul %101, %103, %cst_98 {dimension_numbers = #tpu.dot_dimension_numbers<[1], [0], [0], [1], [0, 0, 1, 1], [], []>} : vector<32x384xbf16>, vector<384x128xbf16>, vector<32x128xf32> -> vector<32x128xf32>
    %105 = arith.addf %99, %104 : vector<32x128xf32>
    %106 = arith.addf %105, %5 : vector<32x128xf32>
    %107 = vector.shape_cast %106 : vector<32x128xf32> to vector<1x4x8x128xf32>
    %c0_99 = arith.constant 0 : index
    %c0_100 = arith.constant 0 : index
    %c0_101 = arith.constant 0 : index
    %c0_102 = arith.constant 0 : index
    %108 = vector.load %arg7[%c0_99, %c0_100, %c0_101, %c0_102] : memref<1x4x8x128xf32, #tpu.memory_space<vmem>>, vector<1x4x8x128xf32>
    tpu.vector_store %arg7[%c0_99, %c0_100, %c0_101, %c0_102], %107 {strides = array<i32>} : memref<1x4x8x128xf32, #tpu.memory_space<vmem>>, vector<1x4x8x128xf32>,
    return
  }
  func.func @transform_0(%arg0: i32) -> (i32, i32, i32, i32) {
    %c0_i32 = arith.constant 0 : i32
    %c0_i32_0 = arith.constant 0 : i32
    %c0_i32_1 = arith.constant 0 : i32
    %c0_i32_2 = arith.constant 0 : i32
    return %arg0, %c0_i32, %c0_i32_0, %c0_i32_1 : i32, i32, i32, i32
  }
  func.func @transform_1(%arg0: i32) -> (i32, i32) {
    %c0_i32 = arith.constant 0 : i32
    %c0_i32_0 = arith.constant 0 : i32
    %c0_i32_1 = arith.constant 0 : i32
    return %c0_i32, %c0_i32_0 : i32, i32
  }
  func.func @transform_2(%arg0: i32) -> (i32, i32) {
    %c0_i32 = arith.constant 0 : i32
    %c0_i32_0 = arith.constant 0 : i32
    %c0_i32_1 = arith.constant 0 : i32
    return %c0_i32, %c0_i32_0 : i32, i32
  }
  func.func @transform_3(%arg0: i32) -> (i32, i32) {
    %c0_i32 = arith.constant 0 : i32
    %c0_i32_0 = arith.constant 0 : i32
    %c0_i32_1 = arith.constant 0 : i32
    return %c0_i32, %c0_i32_0 : i32, i32
  }
  func.func @transform_4(%arg0: i32) -> (i32, i32, i32) {
    %c0_i32 = arith.constant 0 : i32
    %c0_i32_0 = arith.constant 0 : i32
    %c0_i32_1 = arith.constant 0 : i32
    %c0_i32_2 = arith.constant 0 : i32
    return %c0_i32, %c0_i32_0, %c0_i32_1 : i32, i32, i32
  }
  func.func @transform_5(%arg0: i32) -> (i32, i32, i32) {
    %c0_i32 = arith.constant 0 : i32
    %c0_i32_0 = arith.constant 0 : i32
    %c0_i32_1 = arith.constant 0 : i32
    %c0_i32_2 = arith.constant 0 : i32
    return %c0_i32, %c0_i32_0, %c0_i32_1 : i32, i32, i32
  }
  func.func @transform_6(%arg0: i32) -> (i32, i32, i32, i32) {
    %c0_i32 = arith.constant 0 : i32
    %c0_i32_0 = arith.constant 0 : i32
    %c0_i32_1 = arith.constant 0 : i32
    %c0_i32_2 = arith.constant 0 : i32
    return %arg0, %c0_i32, %c0_i32_0, %c0_i32_1 : i32, i32, i32, i32
  }
}

</mosaic_0001>

<bundles_post_ra>
// kernel: tpu_custom_call.1
= control target key start
LH: loop header
LB: loop body
LE: loop exit
PB: predicated region body
PF: predicated region fallthrough
CT: control target
= control target key end

     0   :  { %11 = vsyncpa [#allocation4], 0  ;;  %s4964_s0 = inlined_call_operand.hbm [shape: f32[2,4,8,128], index: 0, kind: input, shape index: {}]   ;;  %s4965_s1 = inlined_call_operand.hbm [shape: f32[2,128], index: 1, kind: input, shape index: {}]   ;;  %s4966_s2 = inlined_call_operand.vmem [shape: f32[2,128], index: 2, kind: input, shape index: {}]   ;;  %s4967_s3 = inlined_call_operand.hbm [shape: f32[128,128], index: 3, kind: input, shape index: {}]   ;;  %s4968_s4 = inlined_call_operand.hbm [shape: bf16[3,384,128], index: 4, kind: input, shape index: {}]   ;;  %s4969_s5 = inlined_call_operand.hbm [shape: bf16[3,384,128], index: 5, kind: input, shape index: {}]   ;;  %s4970_s6 = inlined_call_operand.hbm [shape: f32[2,4,8,128], index: 6, kind: output, shape index: {}]  }
   0x1   :  { %13 = vsyncpa [#allocation4 + $0x1], 0 }
   0x2   :  { %14 = vsyncpa [#allocation7], 0 }
   0x3   :  { %15 = vsyncpa [#allocation10], 0 }
   0x4   :  { %16 = vsyncpa [#allocation5], 0 }
   0x5   :  { %18 = vsyncpa [#allocation5 + $0x1], 0  ;;  %s4437_s21 = smov 0   ;;  %s4439_s22 = smov 0  }
   0x6   :  { %s4441_s23 = smov 0   ;;  %s4443_s24 = smov 0  }
   0x7 LB: > { %s4458_s25 = sadd.s32 4294967295, %s4385_s24   ;;  %s3118_s26 = sadd.s32 4294967294, %s4385_s24   ;;  %s4385_s24 = sphi %s4443_s24, %s5006_s24   ;;  %s4381_s23 = sphi %s4441_s23, %s5005_s23   ;;  %s4377_s22 = sphi %s4439_s22, %s5004_s22   ;;  %s4373_s21 = sphi %s4437_s21, %s5003_s21  }
   0x8   : > { %p44_p0 = scmp.ne.s32.totalorder %s4377_s22, %s4373_s21  ;;  %p4971_p1 = scmp.eq.s32.totalorder %s4458_s25, 0 }
   0x9   : > { %p179_p3 = scmp.eq.s32.totalorder %s3118_s26, 1  ;;  %p3119_p5 = scmp.ge.s32.totalorder %s4385_s24, 1 }
   0xa   : > { %p4467_p4 = por %p4971_p1, %p44_p0  ;;  %p186_p7 = scmp.lt.s32.totalorder %s4385_s24, 3 }
   0xb   : > { %p4472_p6 = por %p179_p3, %p44_p0  ;;  %s4387_s30 = smov [#allocation6]  }
   0xc   : > { %s4977_s27 = scalar_select %p4467_p4, 1, 0 }
   0xd   : > { %s4978_s28 = scalar_select %p4472_p6, 1, 0 }
   0xe   : > { %p4477_p8 = pnand %p3119_p5, %p186_p7  ;;  %s199_s7 = sshll.u32 %s4387_s30, 4  ;;  %s200_s7 = int_to_ptr.vmem [resolvable:$true] %s199_s7 }
   0xf   : > { %s4388_s8 = smov [#allocation9]   ;;  %s4389_s11 = smov [#allocation8]  }
  0x10   : > { %s4979_s29 = scalar_select %p4477_p8, 1, 0 }
  0x11   : > { %p3916_p10 = pneg %p4477_p8  ;;  %s225_s9 = sshll.u32 %s4388_s8, 4  ;;  %s226_s9 = int_to_ptr.vmem [resolvable:$true] %s225_s9 }
  0x12   : > { %s212_s12 = sshll.u32 %s4389_s11, 4  ;;  %s4192_s13 = scalar_lea.vmem %s200_s7, 32  ;;  %s213_s12 = int_to_ptr.vmem [resolvable:$true] %s212_s12 }
  0x13   : > { %p4486_p11 = pnand %p3916_p10, %p4971_p1  ;;  %p4193_p13 = scmp.ne.s32.totalorder %s200_s7, %s4192_s13 }
  0x14   : > { %p4200_p5 = scmp.lt.s32.totalorder %s200_s7, %s200_s7  ;;  %p4201_p7 = scmp.lt.s32.totalorder %s4192_s13, %s4192_s13 }
  0x15   : > { %p4183_p12 = pneg %p4486_p11 }
  0x16   : > { %p4202_p9 = por %p4201_p7, %p4200_p5 }
  0x17   : > { %p4195_p0 = pnand %p4193_p13, %p4183_p12 }
  0x19   : > { %p4196_p3 = pneg %p4195_p0 }
  0x1b   : > { %p4203_p10 = pnand %p4202_p9, %p4196_p3 }
  0x1d   : > { %4206 = shalt.err (!%p4203_p10)
}
  0x1e   : > { %3919 = dma.hbm_to_vmem [thread:$0]  (!%p4486_p11), %s4965_s1, 32, %s200_s7, [#allocation7]  }
  0x1f   : > { %s4218_s16 = scalar_lea.vmem %s226_s9, 9216  ;;  %p4226_p13 = scmp.lt.s32.totalorder %s226_s9, %s226_s9 }
  0x20   : > { %p4219_p1 = scmp.ne.s32.totalorder %s226_s9, %s4218_s16  ;;  %p4227_p0 = scmp.lt.s32.totalorder %s4218_s16, %s4218_s16 }
  0x22   : > { %p4221_p2 = pnand %p4219_p1, %p4183_p12  ;;  %p4228_p4 = por %p4227_p0, %p4226_p13 }
  0x24   : > { %p4222_p6 = pneg %p4221_p2 }
  0x26   : > { %p4229_p8 = pnand %p4228_p4, %p4222_p6 }
  0x28   : > { %4232 = shalt.err (!%p4229_p8)
}
  0x29   : > { %s4390_s17 = smov 64   ;;  %s4391_s18 = smov 4  }
  0x2a   : > { %3925 = dma.hbm_to_vmem [thread:$0]  (!%p4486_p11), %s4968_s4, 9216, %s226_s9, [#allocation10], %s4390_s17, %s4390_s17, %s4391_s18  }
  0x2b   : > { %s4244_s26 = scalar_lea.vmem %s213_s12, 2048  ;;  %p4252_p6 = scmp.lt.s32.totalorder %s213_s12, %s213_s12 }
  0x2c   : > { %p4245_p1 = scmp.ne.s32.totalorder %s213_s12, %s4244_s26  ;;  %p4253_p8 = scmp.lt.s32.totalorder %s4244_s26, %s4244_s26 }
  0x2e   : > { %p4247_p2 = pnand %p4245_p1, %p4183_p12  ;;  %p4254_p9 = por %p4253_p8, %p4252_p6 }
  0x30   : > { %p4248_p4 = pneg %p4247_p2 }
  0x32   : > { %p4255_p3 = pnand %p4254_p9, %p4248_p4 }
  0x34   : > { %4258 = shalt.err (!%p4255_p3)
}
  0x35   : > { %s4974_s30 = smov 128   ;;  %s4975_s7 = smov 8  }
  0x36   : > { %3922 = dma.hbm_to_vmem [thread:$0]  (!%p4486_p11), %s4967_s3, 2048, %s213_s12, [#allocation7], %s4974_s30, %s4974_s30, %s4975_s7  }
  0x37   : > { %s4394_s11 = smov [#allocation11]  }
  0x38   : > { %s238_s13 = sshll.u32 %s4394_s11, 4  ;;  %s239_s13 = int_to_ptr.vmem [resolvable:$true] %s238_s13 }
  0x39   : > { %s4270_s14 = scalar_lea.vmem %s239_s13, 9216  ;;  %p4278_p13 = scmp.lt.s32.totalorder %s239_s13, %s239_s13 }
  0x3a   : > { %p4271_p5 = scmp.ne.s32.totalorder %s239_s13, %s4270_s14  ;;  %p4279_p0 = scmp.lt.s32.totalorder %s4270_s14, %s4270_s14 }
  0x3c   : > { %p4273_p7 = pnand %p4271_p5, %p4183_p12  ;;  %p4280_p1 = por %p4279_p0, %p4278_p13 }
  0x3e   : > { %p4274_p10 = pneg %p4273_p7 }
  0x40   : > { %p4281_p2 = pnand %p4280_p1, %p4274_p10 }
  0x42   : > { %4284 = shalt.err (!%p4281_p2)
}
  0x43   : > { %3928 = dma.hbm_to_vmem [thread:$0]  (!%p4486_p11), %s4969_s5, 9216, %s239_s13, [#allocation10], %s4390_s17, %s4390_s17, %s4391_s18  }
  0x44   : > { %s4534_s16 = sadd.s32 1, %s4385_s24   ;;  %s31_s10 = sadd.s32 1, %s4381_s23 }
  0x45   : > { %s28_s19 = ssub.s32 %s4385_s24, %s4534_s16  ;;  %p38_p12 = scmp.ne.s32.totalorder %s4381_s23, %s4377_s22 }
  0x46   : > { %p29_p4 = scmp.eq.s32.totalorder %s28_s19, 0  ;;  %p39_p6 = scmp.eq.s32.totalorder %s4385_s24, 0 }
  0x47   : > { %p4981_p8 = scmp.eq.s32.totalorder %s4458_s25, 1  ;;  %p3941_p3 = scmp.lt.s32.totalorder %s4385_s24, 2 }
  0x48   : > { %s4550_s26 = scalar_select %p29_p4, %s4381_s23, %s31_s10  }
  0x49   : > { %p4544_p9 = por %p4981_p8, %p38_p12  ;;  %p40_p5 = por %p39_p6, %p38_p12 }
  0x4a   : > { %s252_s8 = sand.u32 1, %s4381_s23   ;;  %s3330_s17 = sshll.u32 %s4385_s24, 9 }
  0x4b   : > { %s4982_s20 = scalar_select %p4544_p9, 1, 0 }
  0x4c   : > { %s3125_s9 = sshll.u32 %s252_s8, 5  ;;  %s4557_s13 = scalar_lea.hbm %s4964_s0, %s3330_s17 }
  0x4d   : > { %s256_s14 = scalar_lea.vmem [#allocation3], %s3125_s9  ;;  %p4561_p11 = pnand %p3941_p3, %p40_p5 }
  0x4e   : > { %s263_s12 = sshll.u32 %s256_s14, 4  ;;  %s4565_s10 = scalar_lea.sflag [#allocation4], %s252_s8  ;;  %s4559_s12 = int_to_ptr.vmem [resolvable:$true] %s263_s12 }
  0x4f   : > { %s4285_s19 = scalar_lea.hbm %s4557_s13, 512  ;;  %p4287_p10 = pneg %p4561_p11 }
  0x50   : > { %p4286_p7 = scmp.ne.s32.totalorder %s4557_s13, %s4285_s19  ;;  %s4290_s9 = scalar_lea.hbm %s4964_s0, 1024 }
  0x51   : > { %p4291_p1 = scmp.lt.s32.totalorder %s4557_s13, %s4964_s0  ;;  %p4292_p2 = scmp.lt.s32.totalorder %s4290_s9, %s4285_s19 }
  0x52   : > { %p4288_p13 = pnand %p4287_p10, %p4286_p7 }
  0x53   : > { %p4293_p12 = por %p4292_p2, %p4291_p1 }
  0x54   : > { %p4289_p0 = pneg %p4288_p13 }
  0x56   : > { %p4294_p4 = pnand %p4293_p12, %p4289_p0 }
  0x58   : > { %4297 = shalt.err (!%p4294_p4)
}
  0x59   : > { %s4298_s8 = scalar_lea.vmem %s4559_s12, 512  ;;  %s4395_s30 = smov [#allocation3]  }
  0x5a   : > { %p4299_p6 = scmp.ne.s32.totalorder %s4559_s12, %s4298_s8  ;;  %s4303_s7 = sshll.u32 %s4395_s30, 4  ;;  %s4304_s7 = int_to_ptr.vmem [resolvable:$false] %s4303_s7 }
  0x5b   : > { %s4305_s17 = scalar_lea.vmem %s4304_s7, 1024  ;;  %p4306_p5 = scmp.lt.s32.totalorder %s4559_s12, %s4304_s7 }
  0x5c   : > { %p4301_p8 = pnand %p4299_p6, %p4287_p10  ;;  %p4307_p7 = scmp.lt.s32.totalorder %s4305_s17, %s4298_s8 }
  0x5e   : > { %p4302_p3 = pneg %p4301_p8  ;;  %p4308_p13 = por %p4307_p7, %p4306_p5 }
  0x60   : > { %p4309_p9 = pnand %p4308_p13, %p4302_p3 }
  0x62   : > { %4312 = shalt.err (!%p4309_p9)
}
  0x63   : > { %s4984_s19 = smov 8   ;;  %s4985_s18 = smov 128  }
  0x64   : > { %3932 = dma.hbm_to_vmem [thread:$0]  (!%p4561_p11), %s4557_s13, 512, %s4559_s12, %s4565_s10, %s4985_s18, %s4985_s18, %s4984_s19  }
  0x65   : > { %p4986_p10 = scmp.ne.s32.totalorder %s4979_s29, 0 }
  0x66   : > { %s4592_s30 = sand.u32 (!%p4986_p10), 1, %s4377_s22   ;;  %p4987_p9 = scmp.ne.s32.totalorder (!%p4986_p10), %s4977_s27, 0 }
  0x67   : > { %275 = sbr.rel (%p4986_p10) target bundleno = 1658 (0x67a), region = 44  ;;  %s3129_s7 = sshll.u32 (!%p4986_p10), %s4592_s30, 5 }
  0x68   : > { %s278_s9 = scalar_lea.sflag (!%p4986_p10), [#allocation4], %s4592_s30  ;;  %s4598_s15 = scalar_lea.vmem (!%p4986_p10), [#allocation3], %s3129_s7 }
  0x6c   : > { %4356 = dma.done.wait (%p4987_p9), %s278_s9, 512  }
  0x6d   : > { %4358 = vsyncadd (%p4987_p9), %s278_s9, 4294966784  ;;  %p4988_p11 = scmp.eq.s32.totalorder %s4458_s25, 0 }
  0x6f   : > { %4360 = dma.done.wait (%p4988_p11), [#allocation7], 2080   ;;  %p4989_p0 = pmov %p4988_p11 }
  0x71   : > { %4362 = vsyncadd (%p4989_p0), [#allocation7], 4294965216  ;;  %p4990_p1 = pmov %p4989_p0 }
  0x72   : > { %p4991_p2 = pmov %p4989_p0 }
  0x73   : > { %4364 = dma.done.wait (%p4990_p1), [#allocation10], 18432  }
  0x74   : > { %4366 = vsyncadd (%p4991_p2), [#allocation10], 4294948864  ;;  %v4396_v0 = vmov 0.0   ;;  %vm4397_vm0 = vmmov 0   ;;  %v347_v1 = vld [vmem:[#allocation8 + $0x78] sm:$0xff]  ;;  %v346_v2 = vld [vmem:[#allocation8 + $0x70] sm:$0xff]  ;;  %v431_v30 = vlaneseq }
  0x75   : > { %3636 = vmatprep.subr.mxu0 %v4396_v0  ;;  %3668 = vmatprep.mubr.msk.f32.mxu0 %vm4397_vm0, %v4396_v0  ;;  %v345_v3 = vld [vmem:[#allocation8 + $0x68] sm:$0xff]  ;;  %v344_v4 = vld [vmem:[#allocation8 + $0x60] sm:$0xff]  ;;  %v343_v5 = vld [vmem:[#allocation8 + $0x58] sm:$0xff]  ;;  %vm547_vm1 = vcmask 1040384   ;;  %vm548_vm2 = vsmask.f32 256 }
  0x76   : > { %3671 = vmatprep.subr.mxu1 %v4396_v0  ;;  %3703 = vmatprep.mubr.msk.f32.mxu1 %vm4397_vm0, %v4396_v0  ;;  %v4623_v6 = vld [vmem:[%s4598_s15] sm:$0xff]  ;;  %v4626_v7 = vld [vmem:[%s4598_s15 + $0x8] sm:$0xff]  ;;  %v342_v8 = vld [vmem:[#allocation8 + $0x50] sm:$0xff]  ;;  %v432_v31 = vshrl.u32 %v431_v30, 7  ;;  %vm610_vm4 = vcmask 1043456   ;;  %vm663_vm9 = vcmask 1043459  }
  0x77   : > { %3637 = vmatpush3.msra.mxu0 %v347_v1  ;;  %3672 = vmatpush3.msra.mxu1 %v347_v1  ;;  %v4630_v9 = vld [vmem:[%s4598_s15 + $0x10] sm:$0xff]  ;;  %v4633_v10 = vld [vmem:[%s4598_s15 + $0x18] sm:$0xff]  ;;  %v352_v11 = vadd.f32 %v4626_v7, %v4623_v6  ;;  %v340_v14 = vld [vmem:[#allocation8 + $0x40] sm:$0xff]  ;;  %vm611_vm5 = vsmask.f32 7938  ;;  %s325_s10 = scalar_lea.vmem [#allocation12], %s3129_s7 }
  0x78   : > { %3638 = vmatprep.subr.mxu0 %v4396_v0  ;;  %3673 = vmatprep.subr.mxu1 %v4396_v0  ;;  %v341_v12 = vld [vmem:[#allocation8 + $0x48] sm:$0xff]  ;;  %v339_v16 = vld [vmem:[#allocation8 + $0x38] sm:$0xff]  ;;  %v338_v18 = vld [vmem:[#allocation8 + $0x30] sm:$0xff]  ;;  %v4664_v32 = vsub.s32 0, %v432_v31  ;;  %vm649_vm6 = vsmask.f32 3328 }
  0x79   : > { %3639 = vmatpush3.msra.mxu0 %v346_v2  ;;  %3674 = vmatpush3.msra.mxu1 %v346_v2  ;;  %v353_v13 = vadd.f32 %v352_v11, %v4630_v9  ;;  %v337_v20 = vld [vmem:[#allocation8 + $0x28] sm:$0xff]  ;;  %v336_v22 = vld [vmem:[#allocation8 + $0x20] sm:$0xff]  ;;  %v335_v24 = vld [vmem:[#allocation8 + $0x18] sm:$0xff]  ;;  %vm664_vm10 = vsmask.f32 7950  ;;  %s3007_s11 = sshll.u32 %s325_s10, 4  ;;  %s4914_s11 = int_to_ptr.vmem [resolvable:$true] %s3007_s11 }
  0x7a   : > { %3640 = vmatprep.subr.mxu0 %v4396_v0  ;;  %3675 = vmatprep.subr.mxu1 %v4396_v0  ;;  %v334_v26 = vld [vmem:[#allocation8 + $0x10] sm:$0xff]  ;;  %v333_v27 = vld [vmem:[#allocation8 + $0x8] sm:$0xff]  ;;  %v332_v28 = vld [vmem:[#allocation8] sm:$0xff]  ;;  %s3339_s14 = sshll.u32 %s4458_s25, 9  ;;  %s2994_s18 = scalar_lea.sflag [#allocation5], %s4592_s30 }
  0x7b   : > { %3641 = vmatpush3.msra.mxu0 %v345_v3  ;;  %3676 = vmatpush3.msra.mxu1 %v345_v3  ;;  %v354_v15 = vadd.f32 %v353_v13, %v4633_v10  ;;  %v3992_v53 = vld [vmem:[#allocation9 + $0x138] sm:$0xff]   ;;  %v3994_v55 = vld [vmem:[#allocation9 + $0x130] sm:$0xff]   ;;  %vm4687_vm3 = vmand %vm547_vm1, %vm548_vm2  ;;  %s4920_s19 = scalar_lea.hbm %s4970_s6, %s3339_s14  ;;  %s4313_s25 = scalar_lea.vmem %s4914_s11, 512 }
  0x7c   : > { %3642 = vmatprep.subr.mxu0 %v4396_v0  ;;  %3677 = vmatprep.subr.mxu1 %v4396_v0  ;;  %v3993_v54 = vld [vmem:[#allocation9 + $0xf8] sm:$0xff]   ;;  %v3995_v56 = vld [vmem:[#allocation9 + $0xf0] sm:$0xff]   ;;  %v550_v58 = vld [vmem:[#allocation2 + $0xc] sm:$0x1]  ;;  %p4314_p12 = scmp.ne.s32.totalorder %s4914_s11, %s4313_s25  ;;  %p5000_p4 = scmp.ne.s32.totalorder %s4982_s20, 0 }
  0x7d   : > { %3643 = vmatpush3.msra.mxu0 %v344_v4  ;;  %3678 = vmatpush3.msra.mxu1 %v344_v4  ;;  %v355_v17 = vrot.slane %v354_v15, 4  ;;  %v553_v59 = vld [vmem:[#allocation2 + $0x18] sm:$0x1]  ;;  %v551_v60 = vsel %vm4687_vm3, 0, %v550_v58  ;;  %v556_v62 = vld [vmem:[#allocation2 + $0x24] sm:$0x1]  ;;  %vm4712_vm7 = vmand %vm610_vm4, %vm611_vm5 }
  0x7e   : > { %3644 = vmatprep.subr.mxu0 %v4396_v0  ;;  %3679 = vmatprep.subr.mxu1 %v4396_v0  ;;  %v554_v61 = vsel %vm4687_vm3, 0, %v553_v59  ;;  %v559_v63 = vld [vmem:[#allocation2 + $0x30] sm:$0x1]  ;;  %552 = vst [vmem:[#allocation2 + $0xc] sm:$0x1] %v551_v60  ;;  %v557_v1 = vsel %vm4687_vm3, 0, %v556_v62  ;;  %vm4718_vm8 = vmand %vm610_vm4, %vm649_vm6  ;;  %p4315_p6 = pnand %p4314_p12, %p5000_p4 }
  0x7f   : > { %3645 = vmatpush3.msra.mxu0 %v343_v5  ;;  %3680 = vmatpush3.msra.mxu1 %v343_v5  ;;  %v356_v19 = vadd.f32 %v355_v17, %v354_v15  ;;  %555 = vst [vmem:[#allocation2 + $0x18] sm:$0x1] %v554_v61  ;;  %v560_v2 = vsel %vm4687_vm3, 0, %v559_v63  ;;  %v3996_v3 = vld [vmem:[#allocation9 + $0x128] sm:$0xff]   ;;  %558 = vst [vmem:[#allocation2 + $0x24] sm:$0x1] %v557_v1 }
  0x80   : > { %3646 = vmatprep.subr.mxu0 %v4396_v0  ;;  %3681 = vmatprep.subr.mxu1 %v4396_v0  ;;  %v3997_v4 = vld [vmem:[#allocation9 + $0xe8] sm:$0xff]   ;;  %561 = vst [vmem:[#allocation2 + $0x30] sm:$0x1] %v560_v2  ;;  %v3998_v5 = vld [vmem:[#allocation9 + $0x178] sm:$0xff]   ;;  %v4006_v13 = vld [vmem:[#allocation9 + $0xd0] sm:$0xff]   ;;  %p4316_p8 = pneg %p4315_p6  ;;  %s4399_s7 = smov [#allocation12]  }
  0x81   : > { %3647 = vmatpush3.msra.mxu0 %v342_v8  ;;  %3682 = vmatpush3.msra.mxu1 %v342_v8  ;;  %v357_v21 = vrot.slane %v356_v19, 2  ;;  %v4001_v8 = vld [vmem:[#allocation9 + $0x170] sm:$0xff]   ;;  %v4004_v11 = vld [vmem:[#allocation9 + $0x168] sm:$0xff]   ;;  %v4010_v17 = vld [vmem:[#allocation9 + $0x158] sm:$0xff]   ;;  %s4317_s9 = sshll.u32 %s4399_s7, 4  ;;  %s4318_s9 = int_to_ptr.vmem [resolvable:$false] %s4317_s9 }
  0x82   : > { %3648 = vmatprep.subr.mxu0 %v4396_v0  ;;  %3683 = vmatprep.subr.mxu1 %v4396_v0  ;;  %v4008_v15 = vld [vmem:[#allocation9 + $0x108] sm:$0xff]   ;;  %vm4736_vm11 = vmand %vm663_vm9, %vm664_vm10  ;;  %v4029_v57 = vld [vmem:[#allocation9 + $0x60] sm:$0xff]   ;;  %s4319_s27 = scalar_lea.vmem %s4318_s9, 1024  ;;  %p4320_p3 = scmp.lt.s32.totalorder %s4914_s11, %s4318_s9 }
  0x83   : > { %3649 = vmatpush3.msra.mxu0 %v341_v12  ;;  %3684 = vmatpush3.msra.mxu1 %v341_v12  ;;  %v358_v23 = vadd.f32 %v357_v21, %v356_v19  ;;  %v4005_v12 = vld [vmem:[#allocation9 + $0x110] sm:$0xff]   ;;  %v4015_v21 = vld [vmem:[#allocation9 + $0x78] sm:$0xff]   ;;  %p4321_p5 = scmp.lt.s32.totalorder %s4319_s27, %s4313_s25 }
  0x84   : > { %3650 = vmatprep.subr.mxu0 %v4396_v0  ;;  %3685 = vmatprep.subr.mxu1 %v4396_v0  ;;  %v4013_v19 = vld [vmem:[#allocation9 + $0x150] sm:$0xff]  }
  0x85   : > { %3651 = vmatpush3.msra.mxu0 %v340_v14  ;;  %3686 = vmatpush3.msra.mxu1 %v340_v14  ;;  %v359_v25 = vrot.slane %v358_v23, 1  ;;  %v4007_v14 = vld [vmem:[#allocation9 + $0x160] sm:$0xff]   ;;  %p4322_p7 = por %p4321_p5, %p4320_p3 }
  0x86   : > { %3652 = vmatprep.subr.mxu0 %v4396_v0  ;;  %3687 = vmatprep.subr.mxu1 %v4396_v0  ;;  %v613_v62 = vld [vmem:[#allocation2 + $0xc] sm:$0xf] }
  0x87   : > { %3653 = vmatpush3.msra.mxu0 %v339_v16  ;;  %3688 = vmatpush3.msra.mxu1 %v339_v16  ;;  %v360_v29 = vadd.f32 %v359_v25, %v358_v23  ;;  %v4009_v16 = vld [vmem:[#allocation9 + $0xc8] sm:$0xff]   ;;  %v4398_v23 = vmov 0   ;;  %v4702_v25 = vld [vmem:[#allocation9 + $0xb8] sm:$0xff]   ;;  %p4323_p13 = pnand %p4322_p7, %p4316_p8 }
  0x88   : > { %3654 = vmatprep.subr.mxu0 %v4396_v0  ;;  %3689 = vmatprep.subr.mxu1 %v4396_v0  ;;  %327 = vst [vmem:[#allocation2] sm:$0xff] %v4398_v23  ;;  %328 = vst [vmem:[#allocation2 + $0x8] sm:$0xf] %v4398_v23 }
  0x89   : > { %3655 = vmatpush3.msra.mxu0 %v338_v18  ;;  %3690 = vmatpush3.msra.mxu1 %v338_v18  ;;  %v4011_v18 = vld [vmem:[#allocation9 + $0x100] sm:$0xff]   ;;  %331 = vst [vmem:[#allocation2 + $0x44] sm:$0xf] %v4398_v23 }
  0x8a   : > { %3656 = vmatprep.subr.mxu0 %v4396_v0  ;;  %3691 = vmatprep.subr.mxu1 %v4396_v0 }
  0x8b   : > { %3657 = vmatpush3.msra.mxu0 %v337_v20  ;;  %3692 = vmatpush3.msra.mxu1 %v337_v20  ;;  %v4012_v20 = vld [vmem:[#allocation9 + $0xc0] sm:$0xff]  }
  0x8c   : > { %3658 = vmatprep.subr.mxu0 %v4396_v0  ;;  %3693 = vmatprep.subr.mxu1 %v4396_v0 }
  0x8d   : > { %3659 = vmatpush3.msra.mxu0 %v336_v22  ;;  %3694 = vmatpush3.msra.mxu1 %v336_v22  ;;  %v4019_v22 = vld [vmem:[#allocation9 + $0x148] sm:$0xff]  }
  0x8e   : > { %3660 = vmatprep.subr.mxu0 %v4396_v0  ;;  %3695 = vmatprep.subr.mxu1 %v4396_v0 }
  0x8f   : > { %3661 = vmatpush3.msra.mxu0 %v335_v24  ;;  %3696 = vmatpush3.msra.mxu1 %v335_v24  ;;  %v4022_v24 = vld [vmem:[#allocation9 + $0x140] sm:$0xff]  }
  0x90   : > { %3662 = vmatprep.subr.mxu0 %v4396_v0  ;;  %3697 = vmatprep.subr.mxu1 %v4396_v0 }
  0x91   : > { %3663 = vmatpush3.msra.mxu0 %v334_v26  ;;  %3698 = vmatpush3.msra.mxu1 %v334_v26 }
  0x92   : > { %3664 = vmatprep.subr.mxu0 %v4396_v0  ;;  %3699 = vmatprep.subr.mxu1 %v4396_v0 }
  0x93   : > { %3665 = vmatpush3.msra.mxu0 %v333_v27  ;;  %3700 = vmatpush3.msra.mxu1 %v333_v27 }
  0x94   : > { %3666 = vmatprep.subr.mxu0 %v4396_v0  ;;  %3701 = vmatprep.subr.mxu1 %v4396_v0 }
  0x95   : > { %3667 = vmatpush3.msra.mxu0 %v332_v28  ;;  %3702 = vmatpush3.msra.mxu1 %v332_v28 }
  0x96   : > { %3669 = vmatmul.mubr.f32.vlgmr.msra.gmra.mxu0 %v360_v29  ;;  %3374 = vmatprep.subr.bf16.mxu0 %v3992_v53  ;;  %v523_v29 = vld [vmem:[#allocation6] sm:$0x1] }
  0x97   : > { %3375 = vmatpush3.bf16.msra.mxu0 %v3993_v54  ;;  %3706 = vmatprep.subr.bf16.mxu1 %v3998_v5 }
  0x98   : > { %3376 = vmatprep.subr.bf16.mxu0 %v3994_v55 }
  0x9b   : > { %3377 = vmatpush3.bf16.msra.mxu0 %v3995_v56 }
  0x9c   : > { %3378 = vmatprep.subr.bf16.mxu0 %v3996_v3 }
  0x9f   : > { %3379 = vmatpush3.bf16.msra.mxu0 %v3997_v4 }
 0x156   : > { %v427_v33 = vpop.f32.mrf.mxu0 }
 0x157   : > { %v434_v34 = vrot.slane %v427_v33, %v4664_v32 }
 0x158   : > { %v3670_v35 = vpop.f32.mrf.mxu0 }
 0x159   : > { %v4668_v36 = vsub.f32 %v4623_v6, %v434_v34  ;;  %v4671_v37 = vsub.f32 %v4626_v7, %v434_v34  ;;  %v4674_v38 = vsub.f32 %v4630_v9, %v434_v34  ;;  %v4677_v39 = vsub.f32 %v4633_v10, %v434_v34  ;;  %v3999_v6 = vld [vmem:[#allocation9 + $0x120] sm:$0xff]   ;;  %v4002_v9 = vld [vmem:[#allocation9 + $0x118] sm:$0xff]  }
 0x15a   : > { %v4000_v7 = vld [vmem:[#allocation9 + $0xe0] sm:$0xff]   ;;  %3380 = vmatprep.subr.bf16.mxu0 %v3999_v6  ;;  %v4003_v10 = vld [vmem:[#allocation9 + $0xd8] sm:$0xff]  }
 0x15b   : > { %v439_v40 = vmul.f32 %v4668_v36, %v4668_v36  ;;  %v440_v41 = vmul.f32 %v4671_v37, %v4671_v37  ;;  %v441_v42 = vmul.f32 %v4674_v38, %v4674_v38  ;;  %v442_v44 = vmul.f32 %v4677_v39, %v4677_v39  ;;  %3381 = vmatpush3.bf16.msra.mxu0 %v4000_v7  ;;  %v3135_v34 = vld [vmem:[#allocation6 + $0x1] ss:$0 sm:$0xff] }
 0x15c   : > { %3382 = vmatprep.subr.bf16.mxu0 %v4002_v9 }
 0x15d   : > { %v443_v43 = vadd.f32 %v440_v41, %v439_v40 }
 0x15f   : > { %v444_v45 = vadd.f32 %v443_v43, %v441_v42  ;;  %3383 = vmatpush3.bf16.msra.mxu0 %v4003_v10  ;;  %v619_v10 = vld [vmem:[#allocation2 + $0x24] sm:$0xf] }
 0x160   : > { %3384 = vmatprep.subr.bf16.mxu0 %v4005_v12 }
 0x161   : > { %v445_v46 = vadd.f32 %v444_v45, %v442_v44 }
 0x163   : > { %v446_v47 = vrot.slane %v445_v46, 4  ;;  %3385 = vmatpush3.bf16.msra.mxu0 %v4006_v13 }
 0x164   : > { %3386 = vmatprep.subr.bf16.mxu0 %v4008_v15 }
 0x165   : > { %v447_v48 = vadd.f32 %v446_v47, %v445_v46 }
 0x167   : > { %v448_v49 = vrot.slane %v447_v48, 2  ;;  %3387 = vmatpush3.bf16.msra.mxu0 %v4009_v16 }
 0x168   : > { %3388 = vmatprep.subr.bf16.mxu0 %v4011_v18 }
 0x169   : > { %v449_v50 = vadd.f32 %v448_v49, %v447_v48 }
 0x16b   : > { %v450_v51 = vrot.slane %v449_v50, 1  ;;  %3389 = vmatpush3.bf16.msra.mxu0 %v4012_v20 }
 0x16c   : > { %3412 = vmatprep.subr.bf16.mxu0 %v4015_v21 }
 0x16d   : > { %v451_v52 = vadd.f32 %v450_v51, %v449_v50 }
 0x16f   : > { %3704 = vmatmul.mubr.f32.vlgmr.msra.gmra.mxu1 %v451_v52 }
 0x170   : > { %3707 = vmatpush3.bf16.msra.mxu1 %v3998_v5  ;;  %v616_v5 = vld [vmem:[#allocation2 + $0x18] sm:$0xf] }
 0x171   : > { %3708 = vmatprep.subr.bf16.mxu1 %v4001_v8 }
 0x174   : > { %3709 = vmatpush3.bf16.msra.mxu1 %v4001_v8 }
 0x175   : > { %3710 = vmatprep.subr.bf16.mxu1 %v4004_v11 }
 0x178   : > { %3711 = vmatpush3.bf16.msra.mxu1 %v4004_v11  ;;  %v622_v11 = vld [vmem:[#allocation2 + $0x30] sm:$0xf] }
 0x179   : > { %3712 = vmatprep.subr.bf16.mxu1 %v4007_v14 }
 0x17c   : > { %3713 = vmatpush3.bf16.msra.mxu1 %v4007_v14 }
 0x17d   : > { %3714 = vmatprep.subr.bf16.mxu1 %v4010_v17 }
 0x180   : > { %3715 = vmatpush3.bf16.msra.mxu1 %v4010_v17 }
 0x181   : > { %3716 = vmatprep.subr.bf16.mxu1 %v4013_v19 }
 0x184   : > { %3717 = vmatpush3.bf16.msra.mxu1 %v4013_v19  ;;  %v651_v19 = vld [vmem:[#allocation2 + $0x14] sm:$0xf] }
 0x185   : > { %3718 = vmatprep.subr.bf16.mxu1 %v4019_v22 }
 0x188   : > { %3719 = vmatpush3.bf16.msra.mxu1 %v4019_v22 }
 0x189   : > { %3720 = vmatprep.subr.bf16.mxu1 %v4022_v24 }
 0x18c   : > { %3721 = vmatpush3.bf16.msra.mxu1 %v4022_v24 }
 0x18d   : > { %3726 = vmatprep.subr.bf16.mxu1 %v4702_v25 }
 0x22f   : > { %v518_v26 = vpop.f32.mrf.mxu1 }
 0x230   : > { %v519_v27 = vadd.f32 1e-05, %v518_v26  ;;  %v654_v26 = vld [vmem:[#allocation2 + $0x20] sm:$0xf] }
 0x231   : > { %v3705_v28 = vpop.f32.mrf.mxu1 }
 0x232   : > { %4156 = vrsqrt.f32 %v519_v27 }
 0x23f   : > { %v4157_v30 = vpop.eup %4156 }
 0x240   : > { %v525_v31 = vmul.f32 %v4157_v30, %v523_v29 }
 0x242   : > { %v529_v33 = vrot.slane %v525_v31, %v4664_v32 }
 0x244   : > { %v530_v35 = vmul.f32 %v529_v33, %v4668_v36  ;;  %v531_v40 = vmul.f32 %v529_v33, %v4671_v37  ;;  %v532_v41 = vmul.f32 %v529_v33, %v4674_v38  ;;  %v533_v42 = vmul.f32 %v529_v33, %v4677_v39  ;;  %v657_v33 = vld [vmem:[#allocation2 + $0x2c] sm:$0xf] }
 0x246   : > { %v538_v43 = vadd.f32 %v3135_v34, %v530_v35  ;;  %v539_v44 = vadd.f32 %v3135_v34, %v531_v40  ;;  %v540_v45 = vadd.f32 %v3135_v34, %v532_v41  ;;  %v541_v46 = vadd.f32 %v3135_v34, %v533_v42 }
 0x248   : > { %v542_v47 = vmax.f32 %v538_v43, 0.0  ;;  %v543_v48 = vmax.f32 %v539_v44, 0.0  ;;  %v544_v49 = vmax.f32 %v540_v45, 0.0  ;;  %v545_v50 = vmax.f32 %v541_v46, 0.0  ;;  %v660_v43 = vld [vmem:[#allocation2 + $0x38] sm:$0xf] }
 0x249   : > { %v4017_v45 = vld [vmem:[#allocation9 + $0x38] sm:$0xff]  }
 0x24a   : > { %v562_v51 = vpack.c.bf16 %v542_v47, %v542_v47  ;;  %v563_v52 = vpack.c.bf16 %v543_v48, %v543_v48  ;;  %v564_v53 = vpack.c.bf16 %v544_v49, %v544_v49  ;;  %v565_v54 = vpack.c.bf16 %v545_v50, %v545_v50  ;;  %v4115_v46 = vld [vmem:[#allocation11 + $0x58] sm:$0xff]  }
 0x24c   : > { %v579_v36 = vshrl.u32 %v562_v51, 16  ;;  %v582_v37 = vshll.u32 %v562_v51, 16  ;;  %v586_v38 = vshrl.u32 %v563_v52, 16  ;;  %v589_v55 = vshll.u32 %v563_v52, 16  ;;  %625 = vst [vmem:[#allocation2 + $0x10] sm:$0xf] %v562_v51 }
 0x24d   : > { %626 = vst [vmem:[#allocation2 + $0x1c] sm:$0xf] %v563_v52  ;;  %627 = vst [vmem:[#allocation2 + $0x28] sm:$0xf] %v564_v53  ;;  %v593_v39 = vshrl.u32 %v564_v53, 16  ;;  %v596_v56 = vshll.u32 %v564_v53, 16 }
 0x24e   : > { %628 = vst [vmem:[#allocation2 + $0x34] sm:$0xf] %v565_v54  ;;  %v600_v58 = vshrl.u32 %v565_v54, 16  ;;  %v603_v59 = vshll.u32 %v565_v54, 16  ;;  %v581_v60 = vrot.slane %v579_v36, 7  ;;  %v588_v61 = vrot.slane %v586_v38, 7 }
 0x24f   : > { %v629_v63 = vrot.slane %v579_v36, 4  ;;  %v630_v1 = vrot.slane %v582_v37, 5  ;;  %v595_v2 = vrot.slane %v593_v39, 7  ;;  %v633_v6 = vrot.slane %v586_v38, 4 }
 0x250   : > { %v602_v3 = vrot.slane %v600_v58, 7  ;;  %v634_v7 = vrot.slane %v589_v55, 5  ;;  %v584_v8 = vor.u32 %v582_v37, %v581_v60  ;;  %v591_v9 = vor.u32 %v589_v55, %v588_v61  ;;  %v4020_v37 = vld [vmem:[#allocation9 + $0x70] sm:$0xff]  }
 0x251   : > { %v631_v12 = vor.u32 %v630_v1, %v629_v63  ;;  %v637_v13 = vrot.slane %v593_v39, 4  ;;  %v598_v14 = vor.u32 %v596_v56, %v595_v2  ;;  %v638_v17 = vrot.slane %v596_v56, 5  ;;  %v4021_v1 = vld [vmem:[#allocation9 + $0x30] sm:$0xff]  }
 0x252   : > { %v605_v15 = vor.u32 %v603_v59, %v602_v3  ;;  %v635_v16 = vor.u32 %v634_v7, %v633_v6  ;;  %v614_v20 = vsel %vm4712_vm7, %v584_v8, %v613_v62  ;;  %v617_v21 = vsel %vm4712_vm7, %v591_v9, %v616_v5  ;;  %v4023_v5 = vld [vmem:[#allocation9 + $0x68] sm:$0xff]  }
 0x253   : > { %v632_v22 = vrot.slane %v631_v12, 4  ;;  %v641_v24 = vrot.slane %v600_v58, 4  ;;  %v620_v27 = vsel %vm4712_vm7, %v598_v14, %v619_v10  ;;  %v639_v30 = vor.u32 %v638_v17, %v637_v13  ;;  %615 = vst [vmem:[#allocation2 + $0xc] sm:$0xf] %v614_v20  ;;  %618 = vst [vmem:[#allocation2 + $0x18] sm:$0xf] %v617_v21 }
 0x254   : > { %v623_v28 = vsel %vm4712_vm7, %v605_v15, %v622_v11  ;;  %v636_v29 = vrot.slane %v635_v16, 4  ;;  %v642_v31 = vrot.slane %v603_v59, 5  ;;  %621 = vst [vmem:[#allocation2 + $0x24] sm:$0xf] %v620_v27  ;;  %v4025_v8 = vld [vmem:[#allocation9 + $0x28] sm:$0xff]   ;;  %v4030_v13 = vld [vmem:[#allocation9 + $0x20] sm:$0xff]  }
 0x255   : > { %624 = vst [vmem:[#allocation2 + $0x30] sm:$0xf] %v623_v28  ;;  %v652_v34 = vsel %vm4718_vm8, %v632_v22, %v651_v19  ;;  %v640_v35 = vrot.slane %v639_v30, 4  ;;  %v4033_v14 = vld [vmem:[#allocation9 + $0x58] sm:$0xff]   ;;  %v4032_v15 = vld [vmem:[#allocation9 + $0xb0] sm:$0xff]   ;;  %v4035_v21 = vld [vmem:[#allocation9 + $0xa8] sm:$0xff]  }
 0x256   : > { %653 = vst [vmem:[#allocation2 + $0x14] sm:$0xf] %v652_v34  ;;  %v655_v40 = vsel %vm4718_vm8, %v636_v29, %v654_v26  ;;  %v643_v41 = vor.u32 %v642_v31, %v641_v24  ;;  %v4034_v16 = vld [vmem:[#allocation9 + $0x18] sm:$0xff]   ;;  %v4036_v20 = vld [vmem:[#allocation9 + $0x50] sm:$0xff]   ;;  %v4039_v24 = vld [vmem:[#allocation9 + $0x48] sm:$0xff]  }
 0x257   : > { %656 = vst [vmem:[#allocation2 + $0x20] sm:$0xf] %v655_v40  ;;  %v658_v42 = vsel %vm4718_vm8, %v640_v35, %v657_v33  ;;  %v4037_v22 = vld [vmem:[#allocation9 + $0x10] sm:$0xff]   ;;  %v4038_v26 = vld [vmem:[#allocation9 + $0xa0] sm:$0xff]   ;;  %v4040_v27 = vld [vmem:[#allocation9 + $0x8] sm:$0xff]  }
 0x258   : > { %v644_v44 = vrot.slane %v643_v41, 4  ;;  %659 = vst [vmem:[#allocation2 + $0x2c] sm:$0xf] %v658_v42  ;;  %v4042_v28 = vld [vmem:[#allocation9 + $0x40] sm:$0xff]   ;;  %v4041_v29 = vld [vmem:[#allocation9 + $0x98] sm:$0xff]   ;;  %v4044_v31 = vld [vmem:[#allocation9 + $0x90] sm:$0xff]  }
 0x259   : > { %v4043_v30 = vld [vmem:[#allocation9] sm:$0xff]   ;;  %v4046_v34 = vld [vmem:[#allocation9 + $0x1b8] sm:$0xff]   ;;  %v4048_v40 = vld [vmem:[#allocation9 + $0x1f0] sm:$0xff]  }
 0x25a   : > { %v661_v47 = vsel %vm4718_vm8, %v644_v44, %v660_v43  ;;  %v4742_v48 = vld [vmem:[#allocation2 + $0xc] sm:$0xff]  ;;  %v4744_v49 = vld [vmem:[#allocation2 + $0x18] sm:$0xff] }
 0x25b   : > { %v1869_v50 = vld [vmem:[#allocation2 + $0xc] sm:$0x1]  ;;  %662 = vst [vmem:[#allocation2 + $0x38] sm:$0xf] %v661_v47  ;;  %v3141_v51 = vcombine.high %v4742_v48, %v4744_v49  ;;  %v3140_v52 = vcombine.low %v4742_v48, %v4744_v49  ;;  %v4750_v53 = vld [vmem:[#allocation2 + $0x24] sm:$0xff]  ;;  %v3171_v11 = vcombine.high %v4398_v23, %v4742_v48  ;;  %v3170_v33 = vcombine.low %v4398_v23, %v4742_v48  ;;  %v4047_v41 = vld [vmem:[#allocation9 + $0x88] sm:$0xff]  }
 0x25c   : > { %v4752_v54 = vld [vmem:[#allocation2 + $0x30] sm:$0xff]  ;;  %v1872_v36 = vld [vmem:[#allocation2 + $0x18] sm:$0x1]  ;;  %v1870_v38 = vsel %vm4687_vm3, 0, %v1869_v50  ;;  %v1875_v39 = vld [vmem:[#allocation2 + $0x24] sm:$0x1]  ;;  %v3174_v35 = vcombine.high %v4744_v49, %v4750_v53 }
 0x25d   : > { %v666_v55 = vld [vmem:[#allocation2 + $0x14] sm:$0x8]  ;;  %999 = vmatprep.mubr.bf16.mxu0 %v3141_v51  ;;  %v3144_v56 = vcombine.high %v4750_v53, %v4752_v54  ;;  %1871 = vst [vmem:[#allocation2 + $0xc] sm:$0x1] %v1870_v38  ;;  %v1873_v60 = vsel %vm4687_vm3, 0, %v1872_v36  ;;  %v1876_v61 = vsel %vm4687_vm3, 0, %v1875_v39  ;;  %v3143_v10 = vcombine.low %v4750_v53, %v4752_v54 }
 0x25e   : > { %v667_v58 = vsel %vm4736_vm11, 0, %v666_v55  ;;  %v669_v59 = vld [vmem:[#allocation2 + $0x20] sm:$0x8]  ;;  %1000 = vmatmul.mubr.bf16.vlgmr.msra.gmra.mxu0 %v3140_v52  ;;  %1874 = vst [vmem:[#allocation2 + $0x18] sm:$0x1] %v1873_v60  ;;  %v4049_v42 = vld [vmem:[#allocation9 + $0x1b0] sm:$0xff]  }
 0x25f   : > { %668 = vst [vmem:[#allocation2 + $0x14] sm:$0x8] %v667_v58  ;;  %v670_v62 = vsel %vm4736_vm11, 0, %v669_v59  ;;  %1877 = vst [vmem:[#allocation2 + $0x24] sm:$0x1] %v1876_v61  ;;  %3413 = vmatpush3.bf16.msra.mxu0 %v4017_v45  ;;  %1007 = vmatprep.mubr.bf16.mxu0 %v3144_v56  ;;  %v4051_v43 = vld [vmem:[#allocation9 + $0x1e8] sm:$0xff]   ;;  %v3173_v45 = vcombine.low %v4744_v49, %v4750_v53 }
 0x260   : > { %v1878_v63 = vld [vmem:[#allocation2 + $0x30] sm:$0x1]  ;;  %671 = vst [vmem:[#allocation2 + $0x20] sm:$0x8] %v670_v62  ;;  %v672_v2 = vld [vmem:[#allocation2 + $0x2c] sm:$0x8]  ;;  %3414 = vmatprep.subr.bf16.mxu0 %v4020_v37 }
 0x261   : > { %v1879_v3 = vsel %vm4687_vm3, 0, %v1878_v63  ;;  %v673_v6 = vsel %vm4736_vm11, 0, %v672_v2  ;;  %v4050_v44 = vld [vmem:[#allocation9 + $0x80] sm:$0xff]   ;;  %v4052_v47 = vld [vmem:[#allocation9 + $0x1a8] sm:$0xff]   ;;  %v4054_v50 = vld [vmem:[#allocation9 + $0x238] sm:$0xff]  }
 0x262   : > { %1880 = vst [vmem:[#allocation2 + $0x30] sm:$0x1] %v1879_v3  ;;  %674 = vst [vmem:[#allocation2 + $0x2c] sm:$0x8] %v673_v6  ;;  %v675_v7 = vld [vmem:[#allocation2 + $0x38] sm:$0x8] }
 0x263   : > { %3415 = vmatpush3.bf16.msra.mxu0 %v4021_v1  ;;  %v676_v9 = vsel %vm4736_vm11, 0, %v675_v7  ;;  %v4055_v48 = vld [vmem:[#allocation9 + $0x1e0] sm:$0xff]   ;;  %v4059_v52 = vld [vmem:[#allocation9 + $0x1d8] sm:$0xff]   ;;  %v4058_v37 = vld [vmem:[#allocation9 + $0x230] sm:$0xff]   ;;  %v3204_v1 = vcombine.high %v4752_v54, %v4398_v23 }
 0x264   : > { %3416 = vmatprep.subr.bf16.mxu0 %v4023_v5  ;;  %677 = vst [vmem:[#allocation2 + $0x38] sm:$0x8] %v676_v9  ;;  %v4057_v51 = vld [vmem:[#allocation9 + $0x1a0] sm:$0xff]   ;;  %v4060_v55 = vld [vmem:[#allocation9 + $0x198] sm:$0xff]   ;;  %v4062_v49 = vld [vmem:[#allocation9 + $0x1d0] sm:$0xff]  }
 0x265   : > { %v4061_v53 = vld [vmem:[#allocation9 + $0x228] sm:$0xff]   ;;  %v4063_v39 = vld [vmem:[#allocation9 + $0x190] sm:$0xff]   ;;  %v4064_v58 = vld [vmem:[#allocation9 + $0x220] sm:$0xff]  }
 0x266   : > { %1008 = vmatmul.mubr.bf16.gmra.mxu0 %v3143_v10  ;;  %v4031_v19 = vld [vmem:[#allocation2 + $0x8] ss:$12 sps:$4 sm:$0xff]   ;;  %v4070_v63 = vld [vmem:[#allocation9 + $0x210] sm:$0xff]  }
 0x267   : > { %v4026_v12 = vld [vmem:[#allocation2 + $0x14] ss:$12 sps:$4 sm:$0xff]   ;;  %3417 = vmatpush3.bf16.msra.mxu0 %v4025_v8  ;;  %1273 = vmatprep.mubr.bf16.mxu0 %v3171_v11  ;;  %v4068_v60 = vld [vmem:[#allocation9 + $0x1c0] sm:$0xff]   ;;  %v3203_v8 = vcombine.low %v4752_v54, %v4398_v23 }
 0x268   : > { %3722 = vmatprep.mubr.bf16.mxu1 %v4026_v12  ;;  %3418 = vmatprep.subr.bf16.mxu0 %v4029_v57  ;;  %v4065_v56 = vld [vmem:[#allocation9 + $0x1c8] sm:$0xff]   ;;  %v4067_v61 = vld [vmem:[#allocation9 + $0x218] sm:$0xff]   ;;  %v4069_v62 = vld [vmem:[#allocation9 + $0x180] sm:$0xff]  }
 0x269   : > { %v4053_v36 = vld [vmem:[#allocation2 + $0x20] ss:$12 sps:$4 sm:$0xff]   ;;  %v4066_v59 = vld [vmem:[#allocation9 + $0x188] sm:$0xff]  }
 0x26a   : > { %v4056_v38 = vld [vmem:[#allocation2 + $0x20] ss:$12 sps:$4 sm:$0xff]   ;;  %v4071_v2 = vld [vmem:[#allocation9 + $0x208] sm:$0xff]  }
 0x26b   : > { %v4028_v17 = vld [vmem:[#allocation2 + $0x2c] ss:$12 sps:$4 sm:$0xff]   ;;  %3419 = vmatpush3.bf16.msra.mxu0 %v4030_v13  ;;  %v4160_v3 = vld [vmem:[#allocation8 + $0x78] sm:$0xff] }
 0x26c   : > { %3420 = vmatprep.subr.bf16.mxu0 %v4033_v14  ;;  %3723 = vmatmul.mubr.bf16.vlgmr.msra.gmra.mxu1 %v4028_v17  ;;  %v4161_v5 = vld [vmem:[#allocation8 + $0x70] sm:$0xff]  ;;  %v4072_v6 = vld [vmem:[#allocation9 + $0x200] sm:$0xff]   ;;  %v4162_v7 = vld [vmem:[#allocation8 + $0x68] sm:$0xff] }
 0x26d   : > { %3727 = vmatpush3.bf16.msra.mxu1 %v4702_v25  ;;  %3742 = vmatprep.mubr.bf16.mxu1 %v4031_v19  ;;  %v4045_v25 = vld [vmem:[#allocation9 + $0x1f8] sm:$0xff]   ;;  %v4163_v9 = vld [vmem:[#allocation8 + $0x60] sm:$0xff]  ;;  %v4165_v11 = vld [vmem:[#allocation8 + $0x50] sm:$0xff] }
 0x26e   : > { %3728 = vmatprep.subr.bf16.mxu1 %v4032_v15  ;;  %v4164_v10 = vld [vmem:[#allocation8 + $0x58] sm:$0xff]  ;;  %v4166_v23 = vld [vmem:[#allocation8 + $0x48] sm:$0xff]  ;;  %v4167_v54 = vld [vmem:[#allocation8 + $0x40] sm:$0xff] }
 0x26f   : > { %3421 = vmatpush3.bf16.msra.mxu0 %v4034_v16  ;;  %v4073_v57 = vld [vmem:[#allocation2 + $0x38] ss:$12 sps:$4 sm:$0xff]   ;;  %v1971_v4 = vld [vmem:[#allocation2 + $0x2c] sm:$0xf] }
 0x270   : > { %3422 = vmatprep.subr.bf16.mxu0 %v4036_v20  ;;  %v4168_v12 = vld [vmem:[#allocation8 + $0x38] sm:$0xff]  ;;  %v4169_v13 = vld [vmem:[#allocation8 + $0x30] sm:$0xff]  ;;  %v4170_v14 = vld [vmem:[#allocation8 + $0x28] sm:$0xff] }
 0x271   : > { %3729 = vmatpush3.bf16.msra.mxu1 %v4032_v15  ;;  %v4171_v15 = vld [vmem:[#allocation8 + $0x20] sm:$0xff]  ;;  %v4172_v16 = vld [vmem:[#allocation8 + $0x18] sm:$0xff]  ;;  %v4173_v17 = vld [vmem:[#allocation8 + $0x10] sm:$0xff] }
 0x272   : > { %3730 = vmatprep.subr.bf16.mxu1 %v4035_v21  ;;  %v4174_v19 = vld [vmem:[#allocation8 + $0x8] sm:$0xff]  ;;  %v4175_v20 = vld [vmem:[#allocation8] sm:$0xff] }
 0x273   : > { %3423 = vmatpush3.bf16.msra.mxu0 %v4037_v22 }
 0x274   : > { %3424 = vmatprep.subr.bf16.mxu0 %v4039_v24 }
 0x275   : > { %3731 = vmatpush3.bf16.msra.mxu1 %v4035_v21 }
 0x276   : > { %3732 = vmatprep.subr.bf16.mxu1 %v4038_v26 }
 0x277   : > { %3425 = vmatpush3.bf16.msra.mxu0 %v4040_v27 }
 0x278   : > { %3426 = vmatprep.subr.bf16.mxu0 %v4042_v28 }
 0x279   : > { %3733 = vmatpush3.bf16.msra.mxu1 %v4038_v26 }
 0x27a   : > { %3734 = vmatprep.subr.bf16.mxu1 %v4041_v29 }
 0x27b   : > { %3427 = vmatpush3.bf16.msra.mxu0 %v4043_v30 }
 0x27c   : > { %3450 = vmatprep.subr.bf16.mxu0 %v4045_v25 }
 0x27d   : > { %3735 = vmatpush3.bf16.msra.mxu1 %v4041_v29 }
 0x27e   : > { %1274 = vmatmul.mubr.bf16.vlgmr.msra.gmra.mxu0 %v3170_v33  ;;  %3736 = vmatprep.subr.bf16.mxu1 %v4044_v31 }
 0x27f   : > { %1281 = vmatprep.mubr.bf16.mxu0 %v3174_v35  ;;  %3451 = vmatpush3.bf16.msra.mxu0 %v4046_v34 }
 0x280   : > { %3452 = vmatprep.subr.bf16.mxu0 %v4048_v40 }
 0x281   : > { %3737 = vmatpush3.bf16.msra.mxu1 %v4044_v31 }
 0x282   : > { %3738 = vmatprep.subr.bf16.mxu1 %v4047_v41 }
 0x283   : > { %3453 = vmatpush3.bf16.msra.mxu0 %v4049_v42 }
 0x284   : > { %3454 = vmatprep.subr.bf16.mxu0 %v4051_v43 }
 0x285   : > { %3739 = vmatpush3.bf16.msra.mxu1 %v4047_v41 }
 0x286   : > { %1282 = vmatmul.mubr.bf16.gmra.mxu0 %v3173_v45  ;;  %3740 = vmatprep.subr.bf16.mxu1 %v4050_v44 }
 0x287   : > { %1605 = vmatprep.mubr.bf16.mxu0 %v3174_v35  ;;  %3455 = vmatpush3.bf16.msra.mxu0 %v4052_v47 }
 0x288   : > { %3456 = vmatprep.subr.bf16.mxu0 %v4055_v48 }
 0x289   : > { %3741 = vmatpush3.bf16.msra.mxu1 %v4050_v44 }
 0x28a   : > { %3746 = vmatprep.subr.bf16.mxu1 %v4054_v50 }
 0x28b   : > { %3457 = vmatpush3.bf16.msra.mxu0 %v4057_v51 }
 0x28c   : > { %3743 = vmatmul.mubr.bf16.vlgmr.msra.gmra.mxu1 %v4053_v36  ;;  %3458 = vmatprep.subr.bf16.mxu0 %v4059_v52 }
 0x28d   : > { %3747 = vmatpush3.bf16.msra.mxu1 %v4054_v50  ;;  %3762 = vmatprep.mubr.bf16.mxu1 %v4056_v38 }
 0x28e   : > { %3748 = vmatprep.subr.bf16.mxu1 %v4058_v37 }
 0x28f   : > { %3459 = vmatpush3.bf16.msra.mxu0 %v4060_v55 }
 0x290   : > { %3460 = vmatprep.subr.bf16.mxu0 %v4062_v49 }
 0x291   : > { %3749 = vmatpush3.bf16.msra.mxu1 %v4058_v37 }
 0x292   : > { %3750 = vmatprep.subr.bf16.mxu1 %v4061_v53 }
 0x293   : > { %3461 = vmatpush3.bf16.msra.mxu0 %v4063_v39 }
 0x294   : > { %3462 = vmatprep.subr.bf16.mxu0 %v4065_v56 }
 0x295   : > { %3751 = vmatpush3.bf16.msra.mxu1 %v4061_v53 }
 0x296   : > { %3752 = vmatprep.subr.bf16.mxu1 %v4064_v58 }
 0x297   : > { %3463 = vmatpush3.bf16.msra.mxu0 %v4066_v59 }
 0x298   : > { %3464 = vmatprep.subr.bf16.mxu0 %v4068_v60 }
 0x299   : > { %3753 = vmatpush3.bf16.msra.mxu1 %v4064_v58 }
 0x29a   : > { %3754 = vmatprep.subr.bf16.mxu1 %v4067_v61 }
 0x29b   : > { %3465 = vmatpush3.bf16.msra.mxu0 %v4069_v62 }
 0x29c   : > { %3766 = vmatprep.subr.mxu0 %v4396_v0 }
 0x29d   : > { %3755 = vmatpush3.bf16.msra.mxu1 %v4067_v61 }
 0x29e   : > { %3756 = vmatprep.subr.bf16.mxu1 %v4070_v63  ;;  %1606 = vmatmul.mubr.bf16.vlgmr.msra.gmra.mxu0 %v3173_v45 }
 0x29f   : > { %1613 = vmatprep.mubr.bf16.mxu0 %v3204_v1  ;;  %3767 = vmatpush3.msra.mxu0 %v4160_v3 }
 0x2a0   : > { %3768 = vmatprep.subr.mxu0 %v4396_v0 }
 0x2a1   : > { %3757 = vmatpush3.bf16.msra.mxu1 %v4070_v63  ;;  %3769 = vmatpush3.msra.mxu0 %v4161_v5 }
 0x2a2   : > { %3758 = vmatprep.subr.bf16.mxu1 %v4071_v2  ;;  %3770 = vmatprep.subr.mxu0 %v4396_v0 }
 0x2a3   : > { %3771 = vmatpush3.msra.mxu0 %v4162_v7 }
 0x2a4   : > { %3772 = vmatprep.subr.mxu0 %v4396_v0 }
 0x2a5   : > { %3759 = vmatpush3.bf16.msra.mxu1 %v4071_v2  ;;  %3773 = vmatpush3.msra.mxu0 %v4163_v9 }
 0x2a6   : > { %3760 = vmatprep.subr.bf16.mxu1 %v4072_v6  ;;  %1614 = vmatmul.mubr.bf16.gmra.mxu0 %v3203_v8 }
 0x2a7   : > { %3774 = vmatprep.subr.mxu0 %v4396_v0  ;;  %3798 = vmatprep.mubr.msk.f32.mxu0 %vm4397_vm0, %v4396_v0 }
 0x2a8   : > { %3775 = vmatpush3.msra.mxu0 %v4164_v10 }
 0x2a9   : > { %3761 = vmatpush3.bf16.msra.mxu1 %v4072_v6  ;;  %3776 = vmatprep.subr.mxu0 %v4396_v0 }
 0x2aa   : > { %3777 = vmatpush3.msra.mxu0 %v4165_v11  ;;  %3801 = vmatprep.subr.mxu1 %v4396_v0 }
 0x2ab   : > { %3778 = vmatprep.subr.mxu0 %v4396_v0 }
 0x2ac   : > { %3763 = vmatmul.mubr.bf16.vlgmr.msra.gmra.mxu1 %v4073_v57  ;;  %3779 = vmatpush3.msra.mxu0 %v4166_v23 }
 0x2ad   : > { %3780 = vmatprep.subr.mxu0 %v4396_v0  ;;  %3802 = vmatpush3.msra.mxu1 %v4160_v3 }
 0x2ae   : > { %3781 = vmatpush3.msra.mxu0 %v4167_v54  ;;  %3803 = vmatprep.subr.mxu1 %v4396_v0 }
 0x2af   : > { %3782 = vmatprep.subr.mxu0 %v4396_v0  ;;  %3804 = vmatpush3.msra.mxu1 %v4161_v5 }
 0x2b0   : > { %3783 = vmatpush3.msra.mxu0 %v4168_v12  ;;  %3805 = vmatprep.subr.mxu1 %v4396_v0 }
 0x2b1   : > { %3784 = vmatprep.subr.mxu0 %v4396_v0  ;;  %3806 = vmatpush3.msra.mxu1 %v4162_v7 }
 0x2b2   : > { %3785 = vmatpush3.msra.mxu0 %v4169_v13  ;;  %3807 = vmatprep.subr.mxu1 %v4396_v0 }
 0x2b3   : > { %3786 = vmatprep.subr.mxu0 %v4396_v0  ;;  %3808 = vmatpush3.msra.mxu1 %v4163_v9 }
 0x2b4   : > { %3787 = vmatpush3.msra.mxu0 %v4170_v14  ;;  %3809 = vmatprep.subr.mxu1 %v4396_v0 }
 0x2b5   : > { %3788 = vmatprep.subr.mxu0 %v4396_v0  ;;  %3810 = vmatpush3.msra.mxu1 %v4164_v10 }
 0x2b6   : > { %3789 = vmatpush3.msra.mxu0 %v4171_v15  ;;  %3811 = vmatprep.subr.mxu1 %v4396_v0 }
 0x2b7   : > { %3790 = vmatprep.subr.mxu0 %v4396_v0  ;;  %3812 = vmatpush3.msra.mxu1 %v4165_v11 }
 0x2b8   : > { %3791 = vmatpush3.msra.mxu0 %v4172_v16  ;;  %3813 = vmatprep.subr.mxu1 %v4396_v0 }
 0x2b9   : > { %3792 = vmatprep.subr.mxu0 %v4396_v0  ;;  %3814 = vmatpush3.msra.mxu1 %v4166_v23 }
 0x2ba   : > { %3793 = vmatpush3.msra.mxu0 %v4173_v17  ;;  %3815 = vmatprep.subr.mxu1 %v4396_v0 }
 0x2bb   : > { %3794 = vmatprep.subr.mxu0 %v4396_v0  ;;  %3816 = vmatpush3.msra.mxu1 %v4167_v54 }
 0x2bc   : > { %3795 = vmatpush3.msra.mxu0 %v4174_v19  ;;  %3817 = vmatprep.subr.mxu1 %v4396_v0 }
 0x2bd   : > { %3796 = vmatprep.subr.mxu0 %v4396_v0  ;;  %3818 = vmatpush3.msra.mxu1 %v4168_v12 }
 0x2be   : > { %3797 = vmatpush3.msra.mxu0 %v4175_v20  ;;  %3819 = vmatprep.subr.mxu1 %v4396_v0 }
 0x2bf   : > { %3820 = vmatpush3.msra.mxu1 %v4169_v13  ;;  %3833 = vmatprep.mubr.msk.f32.mxu1 %vm4397_vm0, %v4396_v0 }
 0x2c0   : > { %3821 = vmatprep.subr.mxu1 %v4396_v0 }
 0x2c1   : > { %3822 = vmatpush3.msra.mxu1 %v4170_v14 }
 0x2c2   : > { %3823 = vmatprep.subr.mxu1 %v4396_v0 }
 0x2c3   : > { %3824 = vmatpush3.msra.mxu1 %v4171_v15 }
 0x2c4   : > { %3825 = vmatprep.subr.mxu1 %v4396_v0 }
 0x2c5   : > { %3826 = vmatpush3.msra.mxu1 %v4172_v16 }
 0x2c6   : > { %3827 = vmatprep.subr.mxu1 %v4396_v0 }
 0x2c7   : > { %3828 = vmatpush3.msra.mxu1 %v4173_v17 }
 0x2c8   : > { %3829 = vmatprep.subr.mxu1 %v4396_v0 }
 0x2c9   : > { %3830 = vmatpush3.msra.mxu1 %v4174_v19 }
 0x2ca   : > { %3831 = vmatprep.subr.mxu1 %v4396_v0 }
 0x2cb   : > { %3832 = vmatpush3.msra.mxu1 %v4175_v20 }
 0x31e   : > { %v3390_v21 = vpop.f32.mrf.mxu0 }
 0x320   : > { %v3391_v22 = vpop.f32.mrf.mxu0 }
 0x321   : > { %v3392_v39 = vadd.f32 %v3391_v22, %v3390_v21 }
 0x322   : > { %v3393_v24 = vpop.f32.mrf.mxu0 }
 0x324   : > { %v3394_v26 = vpop.f32.mrf.mxu0 }
 0x325   : > { %v3395_v58 = vadd.f32 %v3394_v26, %v3393_v24 }
 0x326   : > { %v3396_v27 = vpop.f32.mrf.mxu0 }
 0x328   : > { %v3397_v28 = vpop.f32.mrf.mxu0 }
 0x329   : > { %v3398_v56 = vadd.f32 %v3397_v28, %v3396_v27 }
 0x32a   : > { %v3399_v29 = vpop.f32.mrf.mxu0 }
 0x32c   : > { %v3400_v30 = vpop.f32.mrf.mxu0  ;;  %v3724_v35 = vpop.f32.mrf.mxu1 }
 0x32d   : > { %v3401_v59 = vadd.f32 %v3400_v30, %v3399_v29  ;;  %v1059_v7 = vadd.f32 %v3724_v35, %v3398_v56 }
 0x32e   : > { %v1050_v41 = vpop.f32.mrf.mxu1 }
 0x32f   : > { %v1051_v1 = vadd.f32 %v3392_v39, %v1050_v41 }
 0x330   : > { %v3725_v43 = vpop.f32.mrf.mxu1 }
 0x331   : > { %v1062_v10 = vadd.f32 %v3725_v43, %v3401_v59 }
 0x332   : > { %v1053_v0 = vpop.f32.mrf.mxu1 }
 0x333   : > { %v1054_v2 = vadd.f32 %v3395_v58, %v1053_v0 }
 0x33e   : > { %v3428_v25 = vpop.f32.mrf.mxu0 }
 0x340   : > { %v3429_v31 = vpop.f32.mrf.mxu0 }
 0x341   : > { %v3430_v60 = vadd.f32 %v3429_v31, %v3428_v25 }
 0x342   : > { %v3431_v33 = vpop.f32.mrf.mxu0 }
 0x343   : > { %v1276_v57 = vadd.f32 %v3430_v60, %v1051_v1  ;;  %v4076_v1 = vld [vmem:[#allocation11 + $0x130] sm:$0xff]  }
 0x344   : > { %v3432_v34 = vpop.f32.mrf.mxu0 }
 0x345   : > { %v3433_v61 = vadd.f32 %v3432_v34, %v3431_v33 }
 0x346   : > { %v3434_v40 = vpop.f32.mrf.mxu0 }
 0x347   : > { %v1279_v11 = vadd.f32 %v3433_v61, %v1054_v2  ;;  %v4077_v2 = vld [vmem:[#allocation11 + $0xf0] sm:$0xff]  }
 0x348   : > { %v3435_v42 = vpop.f32.mrf.mxu0 }
 0x349   : > { %v3436_v63 = vadd.f32 %v3435_v42, %v3434_v40 }
 0x34a   : > { %v3437_v44 = vpop.f32.mrf.mxu0 }
 0x34b   : > { %v1284_v54 = vadd.f32 %v3436_v63, %v1059_v7  ;;  %v4075_v63 = vld [vmem:[#allocation11 + $0xf8] sm:$0xff]   ;;  %v4081_v7 = vld [vmem:[#allocation11 + $0x120] sm:$0xff]  }
 0x34c   : > { %v3438_v45 = vpop.f32.mrf.mxu0  ;;  %v3744_v47 = vpop.f32.mrf.mxu1 }
 0x34d   : > { %v3439_v3 = vadd.f32 %v3438_v45, %v3437_v44  ;;  %v1333_v22 = vadd.f32 %v3744_v47, %v1284_v54  ;;  %v4088_v54 = vld [vmem:[#allocation11 + $0xd0] sm:$0xff]  }
 0x34e   : > { %v1324_v51 = vpop.f32.mrf.mxu1 }
 0x34f   : > { %v1287_v15 = vadd.f32 %v3439_v3, %v1062_v10  ;;  %v1325_v17 = vadd.f32 %v1324_v51, %v1276_v57  ;;  %v4078_v3 = vld [vmem:[#allocation11 + $0x128] sm:$0xff]   ;;  %v4084_v10 = vld [vmem:[#allocation11 + $0x118] sm:$0xff]  }
 0x350   : > { %v3745_v37 = vpop.f32.mrf.mxu1  ;;  %v4085_v57 = vld [vmem:[#allocation11 + $0xd8] sm:$0xff]  }
 0x351   : > { %v1336_v28 = vadd.f32 %v3745_v37, %v1287_v15  ;;  %v4092_v15 = vld [vmem:[#allocation11 + $0x158] sm:$0xff]  }
 0x352   : > { %v1327_v49 = vpop.f32.mrf.mxu1 }
 0x353   : > { %v1328_v19 = vadd.f32 %v1327_v49, %v1279_v11  ;;  %v4086_v11 = vld [vmem:[#allocation11 + $0x168] sm:$0xff]  }
 0x35e   : > { %v3466_v48 = vpop.f32.mrf.mxu0 }
 0x360   : > { %v3467_v50 = vpop.f32.mrf.mxu0 }
 0x361   : > { %v3468_v8 = vadd.f32 %v3467_v50, %v3466_v48 }
 0x362   : > { %v3469_v52 = vpop.f32.mrf.mxu0 }
 0x364   : > { %v3470_v36 = vpop.f32.mrf.mxu0 }
 0x365   : > { %v3471_v12 = vadd.f32 %v3470_v36, %v3469_v52 }
 0x366   : > { %v3472_v38 = vpop.f32.mrf.mxu0 }
 0x368   : > { %v3473_v55 = vpop.f32.mrf.mxu0 }
 0x369   : > { %v3474_v9 = vadd.f32 %v3473_v55, %v3472_v38 }
 0x36a   : > { %v3475_v53 = vpop.f32.mrf.mxu0 }
 0x36c   : > { %v3764_v62 = vpop.f32.mrf.mxu1  ;;  %v3476_v6 = vpop.f32.mrf.mxu0 }
 0x36d   : > { %v3477_v14 = vadd.f32 %v3476_v6, %v3475_v53  ;;  %v1665_v20 = vadd.f32 %v3764_v62, %v3474_v9  ;;  %v4074_v62 = vld [vmem:[#allocation11 + $0x138] sm:$0xff]   ;;  %v4083_v9 = vld [vmem:[#allocation11 + $0x170] sm:$0xff]  }
 0x36e   : > { %v1656_v5 = vpop.f32.mrf.mxu1  ;;  %3522 = vmatprep.subr.bf16.mxu0 %v4074_v62  ;;  %v4080_v6 = vld [vmem:[#allocation11 + $0x178] sm:$0xff]  }
 0x36f   : > { %v1657_v13 = vadd.f32 %v3468_v8, %v1656_v5  ;;  %v1673_v29 = vadd.f32 %v1665_v20, %v1333_v22  ;;  %v4079_v5 = vld [vmem:[#allocation11 + $0xe8] sm:$0xff]   ;;  %3836 = vmatprep.subr.bf16.mxu1 %v4080_v6  ;;  %v4082_v8 = vld [vmem:[#allocation11 + $0xe0] sm:$0xff]   ;;  %v4098_v20 = vld [vmem:[#allocation11 + $0x78] sm:$0xff]  }
 0x370   : > { %v3765_v23 = vpop.f32.mrf.mxu1  ;;  %v4104_v22 = vld [vmem:[#allocation11 + $0x140] sm:$0xff]  }
 0x371   : > { %v1671_v24 = vadd.f32 %v1657_v13, %v1325_v17  ;;  %v1668_v26 = vadd.f32 %v3765_v23, %v3477_v14  ;;  %v4087_v23 = vld [vmem:[#allocation11 + $0x110] sm:$0xff]   ;;  %v4090_v13 = vld [vmem:[#allocation11 + $0x108] sm:$0xff]   ;;  %v4094_v17 = vld [vmem:[#allocation11 + $0xc0] sm:$0xff]  }
 0x372   : > { %v1659_v16 = vpop.f32.mrf.mxu1  ;;  %v4091_v14 = vld [vmem:[#allocation11 + $0xc8] sm:$0xff]  }
 0x373   : > { %v1660_v21 = vadd.f32 %v3471_v12, %v1659_v16  ;;  %v1674_v25 = vadd.f32 %v1668_v26, %v1336_v28  ;;  %v4089_v12 = vld [vmem:[#allocation11 + $0x160] sm:$0xff]  }
 0x374   : > { %v4093_v16 = vld [vmem:[#allocation11 + $0x100] sm:$0xff]  }
 0x375   : > { %v1672_v27 = vadd.f32 %v1660_v21, %v1328_v19  ;;  %v4095_v19 = vld [vmem:[#allocation11 + $0x150] sm:$0xff]   ;;  %v4101_v21 = vld [vmem:[#allocation11 + $0x148] sm:$0xff]  }
 0x377   : > { %v1675_v30 = vadd.f32 %v1672_v27, %v1671_v24 }
 0x379   : > { %v1676_v31 = vadd.f32 %v1675_v30, %v1673_v29 }
 0x37b   : > { %v1677_v33 = vadd.f32 %v1676_v31, %v1674_v25 }
 0x37d   : > { %v1678_v34 = vrot.slane %v1677_v33, 4 }
 0x37f   : > { %v1679_v35 = vadd.f32 %v1678_v34, %v1677_v33  ;;  %v3230_v33 = vld [vmem:[%s4966_s2 + $0x1] ss:$0 sm:$0xff] }
 0x381   : > { %v1680_v40 = vrot.slane %v1679_v35, 2 }
 0x383   : > { %v1681_v41 = vadd.f32 %v1680_v40, %v1679_v35 }
 0x385   : > { %v1682_v42 = vrot.slane %v1681_v41, 1 }
 0x387   : > { %v1683_v43 = vadd.f32 %v1682_v42, %v1681_v41 }
 0x389   : > { %3799 = vmatmul.mubr.f32.vlgmr.msra.gmra.mxu0 %v1683_v43 }
 0x38a   : > { %3523 = vmatpush3.bf16.msra.mxu0 %v4075_v63 }
 0x38b   : > { %3524 = vmatprep.subr.bf16.mxu0 %v4076_v1 }
 0x38e   : > { %3525 = vmatpush3.bf16.msra.mxu0 %v4077_v2 }
 0x38f   : > { %3526 = vmatprep.subr.bf16.mxu0 %v4078_v3 }
 0x392   : > { %3527 = vmatpush3.bf16.msra.mxu0 %v4079_v5 }
 0x393   : > { %3528 = vmatprep.subr.bf16.mxu0 %v4081_v7 }
 0x396   : > { %3529 = vmatpush3.bf16.msra.mxu0 %v4082_v8 }
 0x397   : > { %3530 = vmatprep.subr.bf16.mxu0 %v4084_v10 }
 0x39a   : > { %3531 = vmatpush3.bf16.msra.mxu0 %v4085_v57  ;;  %v1929_v57 = vld [vmem:[#allocation2 + $0xc] sm:$0xf] }
 0x39b   : > { %3532 = vmatprep.subr.bf16.mxu0 %v4087_v23 }
 0x39e   : > { %3533 = vmatpush3.bf16.msra.mxu0 %v4088_v54 }
 0x39f   : > { %3534 = vmatprep.subr.bf16.mxu0 %v4090_v13 }
 0x3a2   : > { %3535 = vmatpush3.bf16.msra.mxu0 %v4091_v14  ;;  %v1935_v14 = vld [vmem:[#allocation2 + $0x24] sm:$0xf] }
 0x3a3   : > { %3536 = vmatprep.subr.bf16.mxu0 %v4093_v16 }
 0x3a6   : > { %3537 = vmatpush3.bf16.msra.mxu0 %v4094_v17 }
 0x3a7   : > { %3560 = vmatprep.subr.bf16.mxu0 %v4098_v20 }
 0x449   : > { %v1750_v44 = vpop.f32.mrf.mxu0 }
 0x44a   : > { %v1757_v0 = vrot.slane %v1750_v44, %v4664_v32 }
 0x44b   : > { %v3800_v45 = vpop.f32.mrf.mxu0 }
 0x44c   : > { %v4824_v47 = vsub.f32 %v1671_v24, %v1757_v0  ;;  %v4826_v48 = vsub.f32 %v1672_v27, %v1757_v0  ;;  %v4828_v50 = vsub.f32 %v1673_v29, %v1757_v0  ;;  %v4830_v51 = vsub.f32 %v1674_v25, %v1757_v0  ;;  %v4840_v24 = vld [vmem:[#allocation11 + $0xb8] sm:$0xff]   ;;  %v1846_v29 = vld [vmem:[%s4966_s2] sm:$0x1] }
 0x44e   : > { %v1762_v52 = vmul.f32 %v4824_v47, %v4824_v47  ;;  %v1763_v36 = vmul.f32 %v4826_v48, %v4826_v48  ;;  %v1764_v37 = vmul.f32 %v4828_v50, %v4828_v50  ;;  %v1765_v55 = vmul.f32 %v4830_v51, %v4830_v51 }
 0x450   : > { %v1766_v38 = vadd.f32 %v1763_v36, %v1762_v52 }
 0x452   : > { %v1767_v49 = vadd.f32 %v1766_v38, %v1764_v37 }
 0x454   : > { %v1768_v53 = vadd.f32 %v1767_v49, %v1765_v55 }
 0x456   : > { %v1769_v39 = vrot.slane %v1768_v53, 4 }
 0x458   : > { %v1770_v56 = vadd.f32 %v1769_v39, %v1768_v53 }
 0x45a   : > { %v1771_v58 = vrot.slane %v1770_v56, 2 }
 0x45c   : > { %v1772_v59 = vadd.f32 %v1771_v58, %v1770_v56 }
 0x45e   : > { %v1773_v60 = vrot.slane %v1772_v59, 1 }
 0x460   : > { %v1774_v61 = vadd.f32 %v1773_v60, %v1772_v59 }
 0x462   : > { %3834 = vmatmul.mubr.f32.vlgmr.msra.gmra.mxu1 %v1774_v61 }
 0x463   : > { %3837 = vmatpush3.bf16.msra.mxu1 %v4080_v6 }
 0x464   : > { %3838 = vmatprep.subr.bf16.mxu1 %v4083_v9 }
 0x467   : > { %3839 = vmatpush3.bf16.msra.mxu1 %v4083_v9 }
 0x468   : > { %3840 = vmatprep.subr.bf16.mxu1 %v4086_v11 }
 0x46b   : > { %3841 = vmatpush3.bf16.msra.mxu1 %v4086_v11  ;;  %v1932_v11 = vld [vmem:[#allocation2 + $0x18] sm:$0xf] }
 0x46c   : > { %3842 = vmatprep.subr.bf16.mxu1 %v4089_v12 }
 0x46f   : > { %3843 = vmatpush3.bf16.msra.mxu1 %v4089_v12 }
 0x470   : > { %3844 = vmatprep.subr.bf16.mxu1 %v4092_v15 }
 0x473   : > { %3845 = vmatpush3.bf16.msra.mxu1 %v4092_v15  ;;  %v1938_v15 = vld [vmem:[#allocation2 + $0x30] sm:$0xf] }
 0x474   : > { %3846 = vmatprep.subr.bf16.mxu1 %v4095_v19 }
 0x477   : > { %3847 = vmatpush3.bf16.msra.mxu1 %v4095_v19 }
 0x478   : > { %3848 = vmatprep.subr.bf16.mxu1 %v4101_v21 }
 0x47b   : > { %3849 = vmatpush3.bf16.msra.mxu1 %v4101_v21 }
 0x47c   : > { %3850 = vmatprep.subr.bf16.mxu1 %v4104_v22 }
 0x47f   : > { %3851 = vmatpush3.bf16.msra.mxu1 %v4104_v22 }
 0x480   : > { %3856 = vmatprep.subr.bf16.mxu1 %v4840_v24 }
 0x522   : > { %v1841_v26 = vpop.f32.mrf.mxu1 }
 0x523   : > { %v1842_v27 = vadd.f32 1e-05, %v1841_v26  ;;  %v1965_v26 = vld [vmem:[#allocation2 + $0x14] sm:$0xf] }
 0x524   : > { %v3835_v28 = vpop.f32.mrf.mxu1 }
 0x525   : > { %4158 = vrsqrt.f32 %v1842_v27 }
 0x532   : > { %v4159_v30 = vpop.eup %4158 }
 0x533   : > { %v1848_v25 = vmul.f32 %v4159_v30, %v1846_v29  ;;  %v1968_v29 = vld [vmem:[#allocation2 + $0x20] sm:$0xf] }
 0x535   : > { %v1852_v31 = vrot.slane %v1848_v25, %v4664_v32 }
 0x537   : > { %v1853_v34 = vmul.f32 %v1852_v31, %v4824_v47  ;;  %v1854_v35 = vmul.f32 %v1852_v31, %v4826_v48  ;;  %v1855_v40 = vmul.f32 %v1852_v31, %v4828_v50  ;;  %v1856_v41 = vmul.f32 %v1852_v31, %v4830_v51 }
 0x539   : > { %v1861_v42 = vadd.f32 %v3230_v33, %v1853_v34  ;;  %v1862_v43 = vadd.f32 %v3230_v33, %v1854_v35  ;;  %v1863_v44 = vadd.f32 %v3230_v33, %v1855_v40  ;;  %v1864_v0 = vadd.f32 %v3230_v33, %v1856_v41  ;;  %v1974_v35 = vld [vmem:[#allocation2 + $0x38] sm:$0xf] }
 0x53b   : > { %v1865_v45 = vmax.f32 %v1861_v42, 0.0  ;;  %v1866_v52 = vmax.f32 %v1862_v43, 0.0  ;;  %v1867_v36 = vmax.f32 %v1863_v44, 0.0  ;;  %v1868_v32 = vmax.f32 %v1864_v0, 0.0  ;;  %v4099_v0 = vld [vmem:[#allocation11 + $0x38] sm:$0xff]  }
 0x53d   : > { %v1881_v37 = vpack.c.bf16 %v1865_v45, %v1865_v45  ;;  %v1882_v38 = vpack.c.bf16 %v1866_v52, %v1866_v52  ;;  %v1883_v55 = vpack.c.bf16 %v1867_v36, %v1867_v36  ;;  %v1884_v49 = vpack.c.bf16 %v1868_v32, %v1868_v32  ;;  %v4102_v36 = vld [vmem:[#allocation11 + $0x70] sm:$0xff]  }
 0x53f   : > { %v1898_v53 = vshrl.u32 %v1881_v37, 16  ;;  %v1901_v47 = vshll.u32 %v1881_v37, 16  ;;  %v1905_v39 = vshrl.u32 %v1882_v38, 16  ;;  %v1908_v48 = vshll.u32 %v1882_v38, 16  ;;  %1941 = vst [vmem:[#allocation2 + $0x10] sm:$0xf] %v1881_v37 }
 0x540   : > { %1942 = vst [vmem:[#allocation2 + $0x1c] sm:$0xf] %v1882_v38  ;;  %1943 = vst [vmem:[#allocation2 + $0x28] sm:$0xf] %v1883_v55  ;;  %v1912_v50 = vshrl.u32 %v1883_v55, 16  ;;  %v1915_v51 = vshll.u32 %v1883_v55, 16 }
 0x541   : > { %1944 = vst [vmem:[#allocation2 + $0x34] sm:$0xf] %v1884_v49  ;;  %v1919_v56 = vshrl.u32 %v1884_v49, 16  ;;  %v1922_v58 = vshll.u32 %v1884_v49, 16  ;;  %v1900_v59 = vrot.slane %v1898_v53, 7  ;;  %v1907_v60 = vrot.slane %v1905_v39, 7 }
 0x542   : > { %v1945_v61 = vrot.slane %v1898_v53, 4  ;;  %v1946_v62 = vrot.slane %v1901_v47, 5  ;;  %v1914_v63 = vrot.slane %v1912_v50, 7  ;;  %v1949_v2 = vrot.slane %v1905_v39, 4  ;;  %v4103_v49 = vld [vmem:[#allocation11 + $0x30] sm:$0xff]  }
 0x543   : > { %v1921_v1 = vrot.slane %v1919_v56, 7  ;;  %v1950_v3 = vrot.slane %v1908_v48, 5  ;;  %v1903_v5 = vor.u32 %v1901_v47, %v1900_v59  ;;  %v1910_v6 = vor.u32 %v1908_v48, %v1907_v60  ;;  %v4105_v47 = vld [vmem:[#allocation11 + $0x68] sm:$0xff]   ;;  %v4894_v59 = vld [vmem:[#allocation2] sm:$0xff] }
 0x544   : > { %v1947_v7 = vor.u32 %v1946_v62, %v1945_v61  ;;  %v1953_v8 = vrot.slane %v1912_v50, 4  ;;  %v1917_v9 = vor.u32 %v1915_v51, %v1914_v63  ;;  %v1954_v54 = vrot.slane %v1915_v51, 5  ;;  %v4107_v50 = vld [vmem:[#allocation11 + $0x28] sm:$0xff]   ;;  %v4112_v62 = vld [vmem:[#allocation11 + $0x20] sm:$0xff]   ;;  %v4114_v63 = vld [vmem:[#allocation11 + $0xb0] sm:$0xff]  }
 0x545   : > { %v1924_v10 = vor.u32 %v1922_v58, %v1921_v1  ;;  %v1951_v23 = vor.u32 %v1950_v3, %v1949_v2  ;;  %v1930_v12 = vsel %vm4712_vm7, %v1903_v5, %v1929_v57  ;;  %v1933_v13 = vsel %vm4712_vm7, %v1910_v6, %v1932_v11  ;;  %v4116_v1 = vld [vmem:[#allocation11 + $0x18] sm:$0xff]   ;;  %v4118_v5 = vld [vmem:[#allocation11 + $0x50] sm:$0xff]   ;;  %v4117_v6 = vld [vmem:[#allocation11 + $0xa8] sm:$0xff]  }
 0x546   : > { %v1948_v16 = vrot.slane %v1947_v7, 4  ;;  %v1957_v17 = vrot.slane %v1919_v56, 4  ;;  %v1936_v19 = vsel %vm4712_vm7, %v1917_v9, %v1935_v14  ;;  %v1955_v22 = vor.u32 %v1954_v54, %v1953_v8  ;;  %1931 = vst [vmem:[#allocation2 + $0xc] sm:$0xf] %v1930_v12  ;;  %1934 = vst [vmem:[#allocation2 + $0x18] sm:$0xf] %v1933_v13 }
 0x547   : > { %v1939_v20 = vsel %vm4712_vm7, %v1924_v10, %v1938_v15  ;;  %v1952_v21 = vrot.slane %v1951_v23, 4  ;;  %v1958_v27 = vrot.slane %v1922_v58, 5  ;;  %1937 = vst [vmem:[#allocation2 + $0x24] sm:$0xf] %v1936_v19  ;;  %v4111_v58 = vld [vmem:[#allocation11 + $0x60] sm:$0xff]   ;;  %v4119_v7 = vld [vmem:[#allocation11 + $0x10] sm:$0xff]  }
 0x548   : > { %v1966_v28 = vsel %vm4718_vm8, %v1948_v16, %v1965_v26  ;;  %1940 = vst [vmem:[#allocation2 + $0x30] sm:$0xf] %v1939_v20  ;;  %v1956_v30 = vrot.slane %v1955_v22, 4  ;;  %v4121_v8 = vld [vmem:[#allocation11 + $0x48] sm:$0xff]   ;;  %v4120_v9 = vld [vmem:[#allocation11 + $0xa0] sm:$0xff]   ;;  %v4123_v11 = vld [vmem:[#allocation11 + $0x98] sm:$0xff]  }
 0x549   : > { %v1969_v25 = vsel %vm4718_vm8, %v1952_v21, %v1968_v29  ;;  %1967 = vst [vmem:[#allocation2 + $0x14] sm:$0xf] %v1966_v28  ;;  %v1959_v31 = vor.u32 %v1958_v27, %v1957_v17  ;;  %v4122_v10 = vld [vmem:[#allocation11 + $0x8] sm:$0xff]   ;;  %v4124_v57 = vld [vmem:[#allocation11 + $0x40] sm:$0xff]   ;;  %v4126_v54 = vld [vmem:[#allocation11 + $0x90] sm:$0xff]  }
 0x54a   : > { %1970 = vst [vmem:[#allocation2 + $0x20] sm:$0xf] %v1969_v25  ;;  %v1972_v33 = vsel %vm4718_vm8, %v1956_v30, %v1971_v4  ;;  %v4125_v23 = vld [vmem:[#allocation11] sm:$0xff]   ;;  %v4128_v13 = vld [vmem:[#allocation11 + $0x1b8] sm:$0xff]   ;;  %v4130_v15 = vld [vmem:[#allocation11 + $0x1f0] sm:$0xff]  }
 0x54b   : > { %v1960_v34 = vrot.slane %v1959_v31, 4  ;;  %1973 = vst [vmem:[#allocation2 + $0x2c] sm:$0xf] %v1972_v33  ;;  %v4129_v16 = vld [vmem:[#allocation11 + $0x88] sm:$0xff]   ;;  %v4131_v17 = vld [vmem:[#allocation11 + $0x1b0] sm:$0xff]   ;;  %v4132_v20 = vld [vmem:[#allocation11 + $0x80] sm:$0xff]  }
 0x54c   : > { %v4133_v19 = vld [vmem:[#allocation11 + $0x1e8] sm:$0xff]   ;;  %v4137_v26 = vld [vmem:[#allocation11 + $0x1e0] sm:$0xff]   ;;  %v4136_v27 = vld [vmem:[#allocation11 + $0x238] sm:$0xff]  }
 0x54d   : > { %v1975_v40 = vsel %vm4718_vm8, %v1960_v34, %v1974_v35  ;;  %v4870_v41 = vld [vmem:[#allocation2 + $0xc] sm:$0xff]  ;;  %v4872_v42 = vld [vmem:[#allocation2 + $0x18] sm:$0xff]  ;;  %v4141_v29 = vld [vmem:[#allocation11 + $0x1d8] sm:$0xff]  }
 0x54e   : > { %1976 = vst [vmem:[#allocation2 + $0x38] sm:$0xf] %v1975_v40  ;;  %v3235_v43 = vcombine.low %v4870_v41, %v4872_v42  ;;  %v3236_v44 = vcombine.high %v4870_v41, %v4872_v42  ;;  %v4878_v45 = vld [vmem:[#allocation2 + $0x24] sm:$0xff]  ;;  %v3266_v60 = vcombine.high %v4894_v59, %v4870_v41  ;;  %v3265_v12 = vcombine.low %v4894_v59, %v4870_v41  ;;  %v4134_v22 = vld [vmem:[#allocation11 + $0x1a8] sm:$0xff]   ;;  %v4140_v25 = vld [vmem:[#allocation11 + $0x230] sm:$0xff]  }
 0x54f   : > { %v4880_v52 = vld [vmem:[#allocation2 + $0x30] sm:$0xff]  ;;  %v3269_v14 = vcombine.high %v4872_v42, %v4878_v45  ;;  %v3268_v21 = vcombine.low %v4872_v42, %v4878_v45  ;;  %v4142_v4 = vld [vmem:[#allocation11 + $0x198] sm:$0xff]   ;;  %v4144_v33 = vld [vmem:[#allocation11 + $0x1d0] sm:$0xff]  }
 0x550   : > { %v1977_v32 = vld [vmem:[#allocation2 + $0x14] sm:$0x8]  ;;  %2310 = vmatprep.mubr.bf16.mxu0 %v3236_v44  ;;  %v3239_v18 = vcombine.high %v4878_v45, %v4880_v52  ;;  %v3238_v56 = vcombine.low %v4878_v45, %v4880_v52  ;;  %v4139_v28 = vld [vmem:[#allocation11 + $0x1a0] sm:$0xff]   ;;  %v4145_v35 = vld [vmem:[#allocation11 + $0x190] sm:$0xff]  }
 0x551   : > { %v1978_v37 = vsel %vm4736_vm11, 0, %v1977_v32  ;;  %v1980_v38 = vld [vmem:[#allocation2 + $0x20] sm:$0x8]  ;;  %2311 = vmatmul.mubr.bf16.vlgmr.msra.gmra.mxu0 %v3235_v43  ;;  %v4143_v34 = vld [vmem:[#allocation11 + $0x228] sm:$0xff]   ;;  %v4146_v41 = vld [vmem:[#allocation11 + $0x220] sm:$0xff]  }
 0x552   : > { %1979 = vst [vmem:[#allocation2 + $0x14] sm:$0x8] %v1978_v37  ;;  %v1981_v55 = vsel %vm4736_vm11, 0, %v1980_v38  ;;  %3561 = vmatpush3.bf16.msra.mxu0 %v4099_v0  ;;  %2318 = vmatprep.mubr.bf16.mxu0 %v3239_v18  ;;  %v1983_v53 = vld [vmem:[#allocation2 + $0x2c] sm:$0x8]  ;;  %v4147_v40 = vld [vmem:[#allocation11 + $0x1c8] sm:$0xff]   ;;  %v3298_v37 = vcombine.low %v4880_v52, %v4894_v59 }
 0x553   : > { %1982 = vst [vmem:[#allocation2 + $0x20] sm:$0x8] %v1981_v55  ;;  %3562 = vmatprep.subr.bf16.mxu0 %v4102_v36  ;;  %v1984_v39 = vsel %vm4736_vm11, 0, %v1983_v53  ;;  %v4148_v42 = vld [vmem:[#allocation11 + $0x188] sm:$0xff]   ;;  %v4150_v43 = vld [vmem:[#allocation11 + $0x1c0] sm:$0xff]   ;;  %v4149_v44 = vld [vmem:[#allocation11 + $0x218] sm:$0xff]   ;;  %v3299_v36 = vcombine.high %v4880_v52, %v4894_v59 }
 0x554   : > { %1985 = vst [vmem:[#allocation2 + $0x2c] sm:$0x8] %v1984_v39  ;;  %v4151_v0 = vld [vmem:[#allocation11 + $0x180] sm:$0xff]   ;;  %v4152_v45 = vld [vmem:[#allocation11 + $0x210] sm:$0xff]   ;;  %v4153_v32 = vld [vmem:[#allocation11 + $0x208] sm:$0xff]  }
 0x555   : > { %v1986_v48 = vld [vmem:[#allocation2 + $0x38] sm:$0x8]  ;;  %v4154_v18 = vld [vmem:[#allocation11 + $0x200] sm:$0xff]  }
 0x556   : > { %3563 = vmatpush3.bf16.msra.mxu0 %v4103_v49  ;;  %v1987_v51 = vsel %vm4736_vm11, 0, %v1986_v48 }
 0x557   : > { %3564 = vmatprep.subr.bf16.mxu0 %v4105_v47  ;;  %1988 = vst [vmem:[#allocation2 + $0x38] sm:$0x8] %v1987_v51 }
 0x559   : > { %2319 = vmatmul.mubr.bf16.gmra.mxu0 %v3238_v56  ;;  %v4113_v3 = vld [vmem:[#allocation2 + $0x8] ss:$12 sps:$4 sm:$0xff]  }
 0x55a   : > { %v4108_v61 = vld [vmem:[#allocation2 + $0x14] ss:$12 sps:$4 sm:$0xff]   ;;  %3565 = vmatpush3.bf16.msra.mxu0 %v4107_v50  ;;  %2584 = vmatprep.mubr.bf16.mxu0 %v3266_v60 }
 0x55b   : > { %3852 = vmatprep.mubr.bf16.mxu1 %v4108_v61  ;;  %3566 = vmatprep.subr.bf16.mxu0 %v4111_v58  ;;  %v4135_v30 = vld [vmem:[#allocation2 + $0x20] ss:$12 sps:$4 sm:$0xff]  }
 0x55c   : > { %v4138_v31 = vld [vmem:[#allocation2 + $0x20] ss:$12 sps:$4 sm:$0xff]  }
 0x55e   : > { %v4110_v2 = vld [vmem:[#allocation2 + $0x2c] ss:$12 sps:$4 sm:$0xff]   ;;  %3567 = vmatpush3.bf16.msra.mxu0 %v4112_v62 }
 0x55f   : > { %3568 = vmatprep.subr.bf16.mxu0 %v4115_v46  ;;  %3853 = vmatmul.mubr.bf16.vlgmr.msra.gmra.mxu1 %v4110_v2  ;;  %v4155_v38 = vld [vmem:[#allocation2 + $0x38] ss:$12 sps:$4 sm:$0xff]  }
 0x560   : > { %3857 = vmatpush3.bf16.msra.mxu1 %v4840_v24  ;;  %3872 = vmatprep.mubr.bf16.mxu1 %v4113_v3  ;;  %v4127_v24 = vld [vmem:[#allocation11 + $0x1f8] sm:$0xff]  }
 0x561   : > { %3858 = vmatprep.subr.bf16.mxu1 %v4114_v63 }
 0x562   : > { %3569 = vmatpush3.bf16.msra.mxu0 %v4116_v1 }
 0x563   : > { %3570 = vmatprep.subr.bf16.mxu0 %v4118_v5 }
 0x564   : > { %3859 = vmatpush3.bf16.msra.mxu1 %v4114_v63 }
 0x565   : > { %3860 = vmatprep.subr.bf16.mxu1 %v4117_v6 }
 0x566   : > { %3571 = vmatpush3.bf16.msra.mxu0 %v4119_v7 }
 0x567   : > { %3572 = vmatprep.subr.bf16.mxu0 %v4121_v8 }
 0x568   : > { %3861 = vmatpush3.bf16.msra.mxu1 %v4117_v6 }
 0x569   : > { %3862 = vmatprep.subr.bf16.mxu1 %v4120_v9 }
 0x56a   : > { %3573 = vmatpush3.bf16.msra.mxu0 %v4122_v10 }
 0x56b   : > { %3574 = vmatprep.subr.bf16.mxu0 %v4124_v57 }
 0x56c   : > { %3863 = vmatpush3.bf16.msra.mxu1 %v4120_v9 }
 0x56d   : > { %3864 = vmatprep.subr.bf16.mxu1 %v4123_v11 }
 0x56e   : > { %3575 = vmatpush3.bf16.msra.mxu0 %v4125_v23 }
 0x56f   : > { %3598 = vmatprep.subr.bf16.mxu0 %v4127_v24 }
 0x570   : > { %3865 = vmatpush3.bf16.msra.mxu1 %v4123_v11 }
 0x571   : > { %2585 = vmatmul.mubr.bf16.vlgmr.msra.gmra.mxu0 %v3265_v12  ;;  %3866 = vmatprep.subr.bf16.mxu1 %v4126_v54 }
 0x572   : > { %2592 = vmatprep.mubr.bf16.mxu0 %v3269_v14  ;;  %3599 = vmatpush3.bf16.msra.mxu0 %v4128_v13 }
 0x573   : > { %3600 = vmatprep.subr.bf16.mxu0 %v4130_v15 }
 0x574   : > { %3867 = vmatpush3.bf16.msra.mxu1 %v4126_v54 }
 0x575   : > { %3868 = vmatprep.subr.bf16.mxu1 %v4129_v16 }
 0x576   : > { %3601 = vmatpush3.bf16.msra.mxu0 %v4131_v17 }
 0x577   : > { %3602 = vmatprep.subr.bf16.mxu0 %v4133_v19 }
 0x578   : > { %3869 = vmatpush3.bf16.msra.mxu1 %v4129_v16 }
 0x579   : > { %2593 = vmatmul.mubr.bf16.gmra.mxu0 %v3268_v21  ;;  %3870 = vmatprep.subr.bf16.mxu1 %v4132_v20 }
 0x57a   : > { %2915 = vmatprep.mubr.bf16.mxu0 %v3269_v14  ;;  %3603 = vmatpush3.bf16.msra.mxu0 %v4134_v22 }
 0x57b   : > { %3604 = vmatprep.subr.bf16.mxu0 %v4137_v26 }
 0x57c   : > { %3871 = vmatpush3.bf16.msra.mxu1 %v4132_v20 }
 0x57d   : > { %3876 = vmatprep.subr.bf16.mxu1 %v4136_v27 }
 0x57e   : > { %3605 = vmatpush3.bf16.msra.mxu0 %v4139_v28 }
 0x57f   : > { %3873 = vmatmul.mubr.bf16.vlgmr.msra.gmra.mxu1 %v4135_v30  ;;  %3606 = vmatprep.subr.bf16.mxu0 %v4141_v29 }
 0x580   : > { %3877 = vmatpush3.bf16.msra.mxu1 %v4136_v27  ;;  %3892 = vmatprep.mubr.bf16.mxu1 %v4138_v31 }
 0x581   : > { %3878 = vmatprep.subr.bf16.mxu1 %v4140_v25 }
 0x582   : > { %3607 = vmatpush3.bf16.msra.mxu0 %v4142_v4 }
 0x583   : > { %3608 = vmatprep.subr.bf16.mxu0 %v4144_v33 }
 0x584   : > { %3879 = vmatpush3.bf16.msra.mxu1 %v4140_v25 }
 0x585   : > { %3880 = vmatprep.subr.bf16.mxu1 %v4143_v34 }
 0x586   : > { %3609 = vmatpush3.bf16.msra.mxu0 %v4145_v35 }
 0x587   : > { %3610 = vmatprep.subr.bf16.mxu0 %v4147_v40 }
 0x588   : > { %3881 = vmatpush3.bf16.msra.mxu1 %v4143_v34 }
 0x589   : > { %3882 = vmatprep.subr.bf16.mxu1 %v4146_v41 }
 0x58a   : > { %3611 = vmatpush3.bf16.msra.mxu0 %v4148_v42 }
 0x58b   : > { %3612 = vmatprep.subr.bf16.mxu0 %v4150_v43 }
 0x58c   : > { %3883 = vmatpush3.bf16.msra.mxu1 %v4146_v41 }
 0x58d   : > { %3884 = vmatprep.subr.bf16.mxu1 %v4149_v44 }
 0x58e   : > { %3613 = vmatpush3.bf16.msra.mxu0 %v4151_v0 }
 0x590   : > { %3885 = vmatpush3.bf16.msra.mxu1 %v4149_v44 }
 0x591   : > { %3886 = vmatprep.subr.bf16.mxu1 %v4152_v45  ;;  %2916 = vmatmul.mubr.bf16.vlgmr.msra.gmra.mxu0 %v3268_v21 }
 0x592   : > { %2923 = vmatprep.mubr.bf16.mxu0 %v3299_v36 }
 0x594   : > { %3887 = vmatpush3.bf16.msra.mxu1 %v4152_v45 }
 0x595   : > { %3888 = vmatprep.subr.bf16.mxu1 %v4153_v32 }
 0x598   : > { %3889 = vmatpush3.bf16.msra.mxu1 %v4153_v32 }
 0x599   : > { %3890 = vmatprep.subr.bf16.mxu1 %v4154_v18  ;;  %2924 = vmatmul.mubr.bf16.gmra.mxu0 %v3298_v37 }
 0x59c   : > { %3891 = vmatpush3.bf16.msra.mxu1 %v4154_v18  ;;  %v4177_v18 = vld [vmem:[%s4598_s15 + $0x10] sm:$0xff] }
 0x59f   : > { %3893 = vmatmul.mubr.bf16.vlgmr.msra.gmra.mxu1 %v4155_v38 }
 0x611   : > { %v3538_v55 = vpop.f32.mrf.mxu0 }
 0x613   : > { %v3539_v49 = vpop.f32.mrf.mxu0 }
 0x614   : > { %v3540_v13 = vadd.f32 %v3539_v49, %v3538_v55 }
 0x615   : > { %v3541_v53 = vpop.f32.mrf.mxu0 }
 0x617   : > { %v3542_v47 = vpop.f32.mrf.mxu0 }
 0x618   : > { %v3543_v27 = vadd.f32 %v3542_v47, %v3541_v53  ;;  %v4178_v47 = vld [vmem:[%s4598_s15] sm:$0xff] }
 0x619   : > { %v3544_v39 = vpop.f32.mrf.mxu0 }
 0x61b   : > { %v3545_v48 = vpop.f32.mrf.mxu0 }
 0x61c   : > { %v3546_v10 = vadd.f32 %v3545_v48, %v3544_v39 }
 0x61d   : > { %v3547_v50 = vpop.f32.mrf.mxu0 }
 0x61f   : > { %v3548_v51 = vpop.f32.mrf.mxu0  ;;  %v3854_v62 = vpop.f32.mrf.mxu1 }
 0x620   : > { %v3549_v23 = vadd.f32 %v3548_v51, %v3547_v50  ;;  %v2370_v12 = vadd.f32 %v3854_v62, %v3546_v10  ;;  %v4179_v51 = vld [vmem:[%s4598_s15 + $0x18] sm:$0xff] }
 0x621   : > { %v2361_v59 = vpop.f32.mrf.mxu1 }
 0x622   : > { %v2362_v20 = vadd.f32 %v3540_v13, %v2361_v59 }
 0x623   : > { %v3855_v63 = vpop.f32.mrf.mxu1 }
 0x624   : > { %v2373_v21 = vadd.f32 %v3855_v63, %v3549_v23 }
 0x625   : > { %v2364_v2 = vpop.f32.mrf.mxu1 }
 0x626   : > { %v2365_v40 = vadd.f32 %v3543_v27, %v2364_v2 }
 0x631   : > { %v3576_v56 = vpop.f32.mrf.mxu0 }
 0x633   : > { %v3577_v58 = vpop.f32.mrf.mxu0 }
 0x634   : > { %v3578_v14 = vadd.f32 %v3577_v58, %v3576_v56 }
 0x635   : > { %v3579_v60 = vpop.f32.mrf.mxu0 }
 0x636   : > { %v2587_v29 = vadd.f32 %v3578_v14, %v2362_v20 }
 0x637   : > { %v3580_v61 = vpop.f32.mrf.mxu0 }
 0x638   : > { %v3581_v28 = vadd.f32 %v3580_v61, %v3579_v60  ;;  %v4180_v60 = vld [vmem:[%s4598_s15 + $0x8] sm:$0xff] }
 0x639   : > { %v3582_v52 = vpop.f32.mrf.mxu0 }
 0x63a   : > { %v2590_v45 = vadd.f32 %v3581_v28, %v2365_v40 }
 0x63b   : > { %v3583_v46 = vpop.f32.mrf.mxu0 }
 0x63c   : > { %v3584_v11 = vadd.f32 %v3583_v46, %v3582_v52 }
 0x63d   : > { %v3585_v1 = vpop.f32.mrf.mxu0 }
 0x63e   : > { %v2595_v17 = vadd.f32 %v3584_v11, %v2370_v12 }
 0x63f   : > { %v3586_v3 = vpop.f32.mrf.mxu0  ;;  %v3874_v5 = vpop.f32.mrf.mxu1 }
 0x640   : > { %v3587_v15 = vadd.f32 %v3586_v3, %v3585_v1  ;;  %v2644_v4 = vadd.f32 %v3874_v5, %v2595_v17 }
 0x641   : > { %v2635_v8 = vpop.f32.mrf.mxu1 }
 0x642   : > { %v2598_v30 = vadd.f32 %v3587_v15, %v2373_v21  ;;  %v2636_v42 = vadd.f32 %v2635_v8, %v2587_v29 }
 0x643   : > { %v3875_v24 = vpop.f32.mrf.mxu1 }
 0x644   : > { %v2647_v0 = vadd.f32 %v3875_v24, %v2598_v30 }
 0x645   : > { %v2638_v22 = vpop.f32.mrf.mxu1 }
 0x646   : > { %v2639_v53 = vadd.f32 %v2638_v22, %v2590_v45 }
 0x651   : > { %v3614_v6 = vpop.f32.mrf.mxu0 }
 0x653   : > { %v3615_v7 = vpop.f32.mrf.mxu0 }
 0x654   : > { %v3616_v33 = vadd.f32 %v3615_v7, %v3614_v6 }
 0x655   : > { %v3617_v9 = vpop.f32.mrf.mxu0 }
 0x657   : > { %v3618_v57 = vpop.f32.mrf.mxu0 }
 0x658   : > { %v3619_v32 = vadd.f32 %v3618_v57, %v3617_v9 }
 0x659   : > { %v3620_v54 = vpop.f32.mrf.mxu0 }
 0x65b   : > { %v3621_v16 = vpop.f32.mrf.mxu0 }
 0x65c   : > { %v3622_v19 = vadd.f32 %v3621_v16, %v3620_v54 }
 0x65d   : > { %v3623_v26 = vpop.f32.mrf.mxu0 }
 0x65f   : > { %v3894_v25 = vpop.f32.mrf.mxu1  ;;  %v3624_v31 = vpop.f32.mrf.mxu0 }
 0x660   : > { %v2975_v34 = vadd.f32 %v3894_v25, %v3622_v19  ;;  %v3625_v35 = vadd.f32 %v3624_v31, %v3623_v26 }
 0x661   : > { %v2966_v41 = vpop.f32.mrf.mxu1 }
 0x662   : > { %v2983_v43 = vadd.f32 %v2975_v34, %v2644_v4  ;;  %v2967_v44 = vadd.f32 %v3616_v33, %v2966_v41 }
 0x663   : > { %v3895_v36 = vpop.f32.mrf.mxu1 }
 0x664   : > { %v2987_v37 = vadd.f32 %v4177_v18, %v2983_v43  ;;  %v2981_v38 = vadd.f32 %v2967_v44, %v2636_v42  ;;  %v2978_v55 = vadd.f32 %v3895_v36, %v3625_v35 }
 0x665   : > { %v2969_v49 = vpop.f32.mrf.mxu1 }
 0x666   : > { %2991 = vst [vmem:[%s325_s10 + $0x10] sm:$0xff] %v2987_v37  ;;  %v2985_v39 = vadd.f32 %v4178_v47, %v2981_v38  ;;  %v2984_v48 = vadd.f32 %v2978_v55, %v2647_v0  ;;  %v2970_v50 = vadd.f32 %v3619_v32, %v2969_v49 }
 0x668   : > { %2989 = vst [vmem:[%s325_s10] sm:$0xff] %v2985_v39  ;;  %v2988_v56 = vadd.f32 %v4179_v51, %v2984_v48  ;;  %v2982_v58 = vadd.f32 %v2970_v50, %v2639_v53 }
 0x66a   : > { %2992 = vst [vmem:[%s325_s10 + $0x18] sm:$0xff] %v2988_v56  ;;  %v2986_v61 = vadd.f32 %v4180_v60, %v2982_v58 }
 0x66c   : > { %2990 = vst [vmem:[%s325_s10 + $0x8] sm:$0xff] %v2986_v61 }
 0x66d   : > { %4326 = shalt.err (!%p4323_p13)
}
 0x66e   : > { %s4327_s15 = scalar_lea.hbm %s4920_s19, 512  ;;  %s4331_s12 = scalar_lea.hbm %s4970_s6, 1024 }
 0x66f   : > { %p4328_p10 = scmp.ne.s32.totalorder %s4920_s19, %s4327_s15  ;;  %p4332_p0 = scmp.lt.s32.totalorder %s4920_s19, %s4970_s6 }
 0x670   : > { %p4333_p1 = scmp.lt.s32.totalorder %s4331_s12, %s4327_s15 }
 0x671   : > { %p4329_p9 = pnand %p4328_p10, %p5000_p4 }
 0x672   : > { %p4334_p2 = por %p4333_p1, %p4332_p0 }
 0x673   : > { %p4330_p11 = pneg %p4329_p9 }
 0x675   : > { %p4335_p12 = pnand %p4334_p2, %p4330_p11 }
 0x677   : > { %4338 = shalt.err (!%p4335_p12)
}
 0x678   : > { %s4400_s8 = smov 128   ;;  %s4401_s17 = smov 8  }
 0x679   : > { %3914 = dma.vmem_to_hbm [thread:$0]  (%p5000_p4), %s4914_s11, 512, %s4920_s19, %s2994_s18, %s4400_s8, %s4400_s8, %s4401_s17  }
 0x67a PF: > { %s3022_s25 = sand.u32 1, %s4373_s21   ;;  %p5001_p6 = scmp.ne.s32.totalorder %s4978_s28, 0 }
 0x67b   : > { %p5002_p8 = scmp.ge.s32.totalorder %s4385_s24, 2  ;;  %s3023_s7 = scalar_lea.sflag [#allocation5], %s3022_s25 }
 0x67d   : > { %p3934_p3 = pnand %p5002_p8, %p5001_p6 }
 0x67f   : > { %p3935_p5 = pneg %p3934_p3 }
 0x681   : > { %4368 = dma.done.wait (%p3935_p5), %s3023_s7, 512  }
 0x682   : > { %4370 = vsyncadd (%p3935_p5), %s3023_s7, 4294966784  ;;  %p21_p7 = scmp.ge.s32.totalorder %s4534_s16, 4   ;;  %s5003_s21 = smov %s4377_s22 }
 0x683   : > { %s5004_s22 = smov %s4381_s23  ;;  %s5005_s23 = smov %s4550_s26 }
 0x684   : > { %s5006_s24 = smov %s4534_s16  ;;  %23 = sbr.rel (!%p21_p7) target bundleno = 7 (0x7), region = 112 }
 0x689   :  { %3028 = vsyncpa [#allocation4], 1 }
 0x68a   :  { %3030 = vsyncpa [#allocation4 + $0x1], 1 }
 0x68b   :  { %3031 = vsyncpa [#allocation7], 1 }
 0x68c   :  { %3032 = vsyncpa [#allocation10], 1 }
 0x68d   :  { %3033 = vsyncpa [#allocation5], 1 }
 0x68e   :  { %3035 = vsyncpa [#allocation5 + $0x1], 1 }

</bundles_post_ra>
